<compile_context>
chip_gen: v5e
topology: v5e:2x2
jax: 0.10.0
libtpu: 0.0.40
codegen_flags: <defaults>
</compile_context>

<pallas_src>
import functools
import math

import jax
import jax.numpy as jnp
from jax.experimental import pallas as pl
from jax.experimental.pallas import tpu as pltpu

# ---------------- config (matches the PyTorch module defaults) --------------
VOCAB = 100
EMBED_DIM = 32            # embedding_dim / d_model
N_HEADS = 8               # nn.TransformerEncoderLayer default nhead
HEAD_DIM = EMBED_DIM // N_HEADS
DIM_FF = 128              # default dim_feedforward
N_LAYERS = 1              # default num_layers
LN_EPS = 1e-5             # nn.TransformerEncoderLayer default layer_norm_eps


def _vmem():
    # whole-array block, resident in VMEM
    return pl.BlockSpec(memory_space=pltpu.MemorySpace.VMEM)


def _layernorm(x, g, b):
    mean = jnp.mean(x, axis=-1, keepdims=True)
    cen = x - mean
    var = jnp.mean(cen * cen, axis=-1, keepdims=True)
    return cen * jax.lax.rsqrt(var + LN_EPS) * g + b


# --------------------------- fused forward kernel ---------------------------
def _fused_forward_kernel(ids_ref, emb_ref, pe_ref, *rest, B, S, H, nH, n_layers):
    """Entire TransformerClassificationModel forward in one kernel."""
    dh = H // nH
    BS = B * S
    layer_refs = rest[: 12 * n_layers]
    mlp_w_ref, mlp_b_ref, out_ref, qkv_scratch = rest[12 * n_layers:]

    # --- Embedding lookup as a one-hot MXU matmul (gather stays in-kernel) ---
    ids = ids_ref[...]                                            # [BS, 1] int32
    vocab = emb_ref.shape[0]
    onehot = (jax.lax.broadcasted_iota(jnp.int32, (BS, vocab), 1) == ids)
    onehot = onehot.astype(jnp.float32)
    h = jnp.dot(onehot, emb_ref[...], preferred_element_type=jnp.float32)
    h = h * jnp.float32(math.sqrt(H)) + pe_ref[...]               # [BS, H]
    # TODO(synk): dropout (p=0.1 in PositionalEncoding / encoder layer) is
    # treated as identity (inference-mode semantics).

    scale = jnp.float32(1.0 / math.sqrt(dh))
    for l in range(n_layers):
        (w_qkv, b_qkv, w_o, b_o, ln1_g, ln1_b,
         w_ff1, b_ff1, w_ff2, b_ff2, ln2_g, ln2_b) = layer_refs[12 * l: 12 * (l + 1)]

        # Fused Q|K|V projection: one [BS, H] x [H, 3H] matmul.
        qkv_scratch[...] = (jnp.dot(h, w_qkv[...],
                                    preferred_element_type=jnp.float32)
                            + b_qkv[...])

        # Per-(batch, head) attention.  The out-projection is folded into the
        # per-head accumulation, so no lane-axis concatenation is needed.
        attn_rows = []
        for b in range(B):
            r0, r1 = b * S, (b + 1) * S
            acc = jnp.zeros((S, H), jnp.float32)
            for hd in range(nH):
                c0 = hd * dh
                q = qkv_scratch[r0:r1, c0:c0 + dh]                        # [S, dh]
                k = qkv_scratch[r0:r1, H + c0:H + c0 + dh]                # [S, dh]
                v = qkv_scratch[r0:r1, 2 * H + c0:2 * H + c0 + dh]        # [S, dh]
                s = jax.lax.dot_general(q, k, (((1,), (1,)), ((), ())),
                                        preferred_element_type=jnp.float32) * scale
                m = jnp.max(s, axis=-1, keepdims=True)
                p = jnp.exp(s - m)
                p = p * pl.reciprocal(jnp.sum(p, axis=-1, keepdims=True),
                                      approx=True)
                ctx = jnp.dot(p, v, preferred_element_type=jnp.float32)   # [S, dh]
                acc = acc + jnp.dot(ctx, w_o[c0:c0 + dh, :],
                                    preferred_element_type=jnp.float32)
            attn_rows.append(acc)
        attn_out = jnp.concatenate(attn_rows, axis=0) + b_o[...]          # [BS, H]

        # Post-LN residual blocks (norm_first=False, activation=ReLU).
        h = _layernorm(h + attn_out, ln1_g[...], ln1_b[...])

        ff = jnp.dot(h, w_ff1[...], preferred_element_type=jnp.float32) + b_ff1[...]
        ff = jnp.maximum(ff, 0.0)
        ff = jnp.dot(ff, w_ff2[...], preferred_element_type=jnp.float32) + b_ff2[...]
        h = _layernorm(h + ff, ln2_g[...], ln2_b[...])

    # --- mean over sequence axis, classifier head, sigmoid ------------------
    pooled = jnp.concatenate(
        [jnp.mean(h[b * S:(b + 1) * S, :], axis=0, keepdims=True) for b in range(B)],
        axis=0)                                                           # [B, H]
    logits = (jnp.dot(pooled, mlp_w_ref[...], preferred_element_type=jnp.float32)
              + mlp_b_ref[...])                                           # [B, 1]
    out_ref[...] = 1.0 / (1.0 + jnp.exp(-logits))


# --------------------------- parameters -------------------------------------
def _dense(key, fan_in, fan_out):
    kw, kb = jax.random.split(key)
    w = jax.random.normal(kw, (fan_in, fan_out), jnp.float32) * 0.02
    b = jax.random.normal(kb, (1, fan_out), jnp.float32) * 0.02
    return w, b


def init_params(key):
    keys = jax.random.split(key, 2 + N_LAYERS)
    params = {
        "embedding": jax.random.normal(keys[0], (VOCAB, EMBED_DIM), jnp.float32) * 0.02,
        "layers": [],
    }
    for i in range(N_LAYERS):
        lk = jax.random.split(keys[1 + i], 4)
        params["layers"].append({
            "qkv": _dense(lk[0], EMBED_DIM, 3 * EMBED_DIM),       # fused Wq|Wk|Wv
            "attn_out": _dense(lk[1], EMBED_DIM, EMBED_DIM),
            "ln1_g": jnp.ones((1, EMBED_DIM), jnp.float32),
            "ln1_b": jnp.zeros((1, EMBED_DIM), jnp.float32),
            "ffn_in": _dense(lk[2], EMBED_DIM, DIM_FF),
            "ffn_out": _dense(lk[3], DIM_FF, EMBED_DIM),
            "ln2_g": jnp.ones((1, EMBED_DIM), jnp.float32),
            "ln2_b": jnp.zeros((1, EMBED_DIM), jnp.float32),
        })
    params["mlp"] = _dense(keys[1 + N_LAYERS], EMBED_DIM, 1)
    return params


def sinusoidal_pe(seq_len, d_model):
    position = jnp.arange(seq_len, dtype=jnp.float32)[:, None]
    div_term = jnp.exp(jnp.arange(0, d_model, 2, dtype=jnp.float32)
                       * (-math.log(10000.0) / d_model))
    pe = jnp.zeros((seq_len, d_model), jnp.float32)
    pe = pe.at[:, 0::2].set(jnp.sin(position * div_term))
    pe = pe.at[:, 1::2].set(jnp.cos(position * div_term))
    return pe


# --------------------------- forward pass ------------------------------------
def transformer_classification_forward(params, x):
    """sigmoid(mlp(mean_S(transformer(pos_enc(emb(x) * sqrt(d)))))).view(-1)"""
    B, S = x.shape
    ids = x.reshape(B * S, 1).astype(jnp.int32)
    pe = jnp.tile(sinusoidal_pe(S, EMBED_DIM), (B, 1))            # [B*S, H] constant

    inputs = [ids, params["embedding"], pe]
    for layer in params["layers"]:
        inputs += [layer["qkv"][0], layer["qkv"][1],
                   layer["attn_out"][0], layer["attn_out"][1],
                   layer["ln1_g"], layer["ln1_b"],
                   layer["ffn_in"][0], layer["ffn_in"][1],
                   layer["ffn_out"][0], layer["ffn_out"][1],
                   layer["ln2_g"], layer["ln2_b"]]
    inputs += [params["mlp"][0], params["mlp"][1]]

    kernel = functools.partial(_fused_forward_kernel, B=B, S=S, H=EMBED_DIM,
                               nH=N_HEADS, n_layers=N_LAYERS)
    probs = pl.pallas_call(
        kernel,
        out_shape=jax.ShapeDtypeStruct((B, 1), jnp.float32),
        in_specs=[_vmem()] * len(inputs),
        out_specs=_vmem(),
        scratch_shapes=[pltpu.VMEM((B * S, 3 * EMBED_DIM), jnp.float32)],
    )(*inputs)
    # TODO(synk): at realistic batch sizes add a grid over B with
    # dimension_semantics=("parallel",) to use both v7x TensorCores.
    return probs.reshape(-1)                                      # .view(-1)


# --------------------------- main --------------------------------------------
if __name__ == "__main__":
    key = jax.random.PRNGKey(0)
    kp, kx = jax.random.split(key)
    params = init_params(kp)

    B, S = 2, 8
    x = jax.random.randint(kx, (B, S), 0, VOCAB, dtype=jnp.int32)

    fwd = jax.jit(functools.partial(transformer_classification_forward, params))
    out = jax.block_until_ready(fwd(x))

    assert out.shape == (B,)
    assert bool(jnp.all((out >= 0.0) & (out <= 1.0)))
    print("KERNEL_OK")
</pallas_src>

<mosaic_0001>
module attributes {stable_mosaic.version = 11 : i64} {
  func.func @_fused_forward_kernel(%arg0: memref<16x1xi32, #tpu.memory_space<vmem>>, %arg1: memref<100x32xf32, #tpu.memory_space<vmem>>, %arg2: memref<16x32xf32, #tpu.memory_space<vmem>>, %arg3: memref<32x96xf32, #tpu.memory_space<vmem>>, %arg4: memref<1x96xf32, #tpu.memory_space<vmem>>, %arg5: memref<32x32xf32, #tpu.memory_space<vmem>>, %arg6: memref<1x32xf32, #tpu.memory_space<vmem>>, %arg7: memref<1x32xf32, #tpu.memory_space<vmem>>, %arg8: memref<1x32xf32, #tpu.memory_space<vmem>>, %arg9: memref<32x128xf32, #tpu.memory_space<vmem>>, %arg10: memref<1x128xf32, #tpu.memory_space<vmem>>, %arg11: memref<128x32xf32, #tpu.memory_space<vmem>>, %arg12: memref<1x32xf32, #tpu.memory_space<vmem>>, %arg13: memref<1x32xf32, #tpu.memory_space<vmem>>, %arg14: memref<1x32xf32, #tpu.memory_space<vmem>>, %arg15: memref<32x1xf32, #tpu.memory_space<vmem>>, %arg16: memref<1x1xf32, #tpu.memory_space<vmem>>, %arg17: memref<2x1xf32, #tpu.memory_space<vmem>>, %arg18: memref<16x96xf32, #tpu.memory_space<vmem>>) attributes {dimension_semantics = [], scalar_prefetch = 0 : i64, scratch_operands = 1 : i64, tpu.core_type = #tpu.core_type<tc>} {
    %c0 = arith.constant 0 : index
    %c0_0 = arith.constant 0 : index
    %0 = vector.load %arg0[%c0, %c0_0] : memref<16x1xi32, #tpu.memory_space<vmem>>, vector<16x1xi32>
    %1 = tpu.iota {dimensions = array<i32: 1>} : vector<16x100xi32>
    %2 = vector.broadcast %0 : vector<16x1xi32> to vector<16x100xi32>
    %3 = arith.cmpi eq, %1, %2 : vector<16x100xi32>
    %4 = arith.extui %3 : vector<16x100xi1> to vector<16x100xi32>
    %5 = arith.sitofp %4 : vector<16x100xi32> to vector<16x100xf32>
    %c0_1 = arith.constant 0 : index
    %c0_2 = arith.constant 0 : index
    %6 = vector.load %arg1[%c0_1, %c0_2] : memref<100x32xf32, #tpu.memory_space<vmem>>, vector<100x32xf32>
    %cst = arith.constant dense<0.000000e+00> : vector<16x32xf32>
    %7 = tpu.matmul %5, %6, %cst {dimension_numbers = #tpu.dot_dimension_numbers<[1], [0], [0], [1], [0, 0, 1, 1], [], []>} : vector<16x100xf32>, vector<100x32xf32>, vector<16x32xf32> -> vector<16x32xf32>
    %cst_3 = arith.constant 5.65685415 : f32
    %8 = vector.broadcast %cst_3 : f32 to vector<16x32xf32>
    %9 = arith.mulf %7, %8 : vector<16x32xf32>
    %c0_4 = arith.constant 0 : index
    %c0_5 = arith.constant 0 : index
    %10 = vector.load %arg2[%c0_4, %c0_5] : memref<16x32xf32, #tpu.memory_space<vmem>>, vector<16x32xf32>
    %11 = arith.addf %9, %10 : vector<16x32xf32>
    %c0_6 = arith.constant 0 : index
    %c0_7 = arith.constant 0 : index
    %12 = vector.load %arg3[%c0_6, %c0_7] : memref<32x96xf32, #tpu.memory_space<vmem>>, vector<32x96xf32>
    %cst_8 = arith.constant dense<0.000000e+00> : vector<16x96xf32>
    %13 = tpu.matmul %11, %12, %cst_8 {dimension_numbers = #tpu.dot_dimension_numbers<[1], [0], [0], [1], [0, 0, 1, 1], [], []>} : vector<16x32xf32>, vector<32x96xf32>, vector<16x96xf32> -> vector<16x96xf32>
    %c0_9 = arith.constant 0 : index
    %c0_10 = arith.constant 0 : index
    %14 = vector.load %arg4[%c0_9, %c0_10] : memref<1x96xf32, #tpu.memory_space<vmem>>, vector<1x96xf32>
    %15 = vector.broadcast %14 : vector<1x96xf32> to vector<16x96xf32>
    %16 = arith.addf %13, %15 : vector<16x96xf32>
    %c0_11 = arith.constant 0 : index
    %c0_12 = arith.constant 0 : index
    %17 = vector.load %arg18[%c0_11, %c0_12] : memref<16x96xf32, #tpu.memory_space<vmem>>, vector<16x96xf32>
    tpu.vector_store %arg18[%c0_11, %c0_12], %16 {strides = array<i32>} : memref<16x96xf32, #tpu.memory_space<vmem>>, vector<16x96xf32>,
    %cst_13 = arith.constant 0.000000e+00 : f32
    %18 = vector.broadcast %cst_13 : f32 to vector<8x32xf32>
    %c0_14 = arith.constant 0 : index
    %c0_15 = arith.constant 0 : index
    %19 = vector.load %arg18[%c0_14, %c0_15] : memref<16x96xf32, #tpu.memory_space<vmem>>, vector<8x4xf32>
    %c0_16 = arith.constant 0 : index
    %c32 = arith.constant 32 : index
    %20 = vector.load %arg18[%c0_16, %c32] : memref<16x96xf32, #tpu.memory_space<vmem>>, vector<8x4xf32>
    %c0_17 = arith.constant 0 : index
    %c64 = arith.constant 64 : index
    %21 = vector.load %arg18[%c0_17, %c64] : memref<16x96xf32, #tpu.memory_space<vmem>>, vector<8x4xf32>
    %cst_18 = arith.constant dense<0.000000e+00> : vector<8x8xf32>
    %22 = tpu.matmul %19, %20, %cst_18 {dimension_numbers = #tpu.dot_dimension_numbers<[1], [1], [0], [0], [0, 0, 1, 0], [], []>} : vector<8x4xf32>, vector<8x4xf32>, vector<8x8xf32> -> vector<8x8xf32>
    %cst_19 = arith.constant 5.000000e-01 : f32
    %23 = vector.broadcast %cst_19 : f32 to vector<8x8xf32>
    %24 = arith.mulf %22, %23 : vector<8x8xf32>
    %cst_20 = arith.constant dense<0xFF800000> : vector<8xf32>
    %25 = vector.multi_reduction <maximumf>, %24, %cst_20 [1] : vector<8x8xf32> to vector<8xf32>
    %26 = vector.shape_cast %25 : vector<8xf32> to vector<8x1xf32>
    %27 = vector.broadcast %26 : vector<8x1xf32> to vector<8x8xf32>
    %28 = arith.subf %24, %27 : vector<8x8xf32>
    %29 = math.exp %28 : vector<8x8xf32>
    %cst_21 = arith.constant dense<0.000000e+00> : vector<8xf32>
    %30 = vector.multi_reduction <add>, %29, %cst_21 [1] : vector<8x8xf32> to vector<8xf32>
    %31 = vector.shape_cast %30 : vector<8xf32> to vector<8x1xf32>
    %32 = tpu.reciprocal %31 {approx = true} : vector<8x1xf32> -> vector<8x1xf32>
    %33 = vector.broadcast %32 : vector<8x1xf32> to vector<8x8xf32>
    %34 = arith.mulf %29, %33 : vector<8x8xf32>
    %cst_22 = arith.constant dense<0.000000e+00> : vector<8x4xf32>
    %35 = tpu.matmul %34, %21, %cst_22 {dimension_numbers = #tpu.dot_dimension_numbers<[1], [0], [0], [1], [0, 0, 1, 1], [], []>} : vector<8x8xf32>, vector<8x4xf32>, vector<8x4xf32> -> vector<8x4xf32>
    %c0_23 = arith.constant 0 : index
    %c0_24 = arith.constant 0 : index
    %36 = vector.load %arg5[%c0_23, %c0_24] : memref<32x32xf32, #tpu.memory_space<vmem>>, vector<4x32xf32>
    %cst_25 = arith.constant dense<0.000000e+00> : vector<8x32xf32>
    %37 = tpu.matmul %35, %36, %cst_25 {dimension_numbers = #tpu.dot_dimension_numbers<[1], [0], [0], [1], [0, 0, 1, 1], [], []>} : vector<8x4xf32>, vector<4x32xf32>, vector<8x32xf32> -> vector<8x32xf32>
    %38 = arith.addf %18, %37 : vector<8x32xf32>
    %c0_26 = arith.constant 0 : index
    %c4 = arith.constant 4 : index
    %39 = vector.load %arg18[%c0_26, %c4] : memref<16x96xf32, #tpu.memory_space<vmem>>, vector<8x4xf32>
    %c0_27 = arith.constant 0 : index
    %c36 = arith.constant 36 : index
    %40 = vector.load %arg18[%c0_27, %c36] : memref<16x96xf32, #tpu.memory_space<vmem>>, vector<8x4xf32>
    %c0_28 = arith.constant 0 : index
    %c68 = arith.constant 68 : index
    %41 = vector.load %arg18[%c0_28, %c68] : memref<16x96xf32, #tpu.memory_space<vmem>>, vector<8x4xf32>
    %cst_29 = arith.constant dense<0.000000e+00> : vector<8x8xf32>
    %42 = tpu.matmul %39, %40, %cst_29 {dimension_numbers = #tpu.dot_dimension_numbers<[1], [1], [0], [0], [0, 0, 1, 0], [], []>} : vector<8x4xf32>, vector<8x4xf32>, vector<8x8xf32> -> vector<8x8xf32>
    %cst_30 = arith.constant 5.000000e-01 : f32
    %43 = vector.broadcast %cst_30 : f32 to vector<8x8xf32>
    %44 = arith.mulf %42, %43 : vector<8x8xf32>
    %cst_31 = arith.constant dense<0xFF800000> : vector<8xf32>
    %45 = vector.multi_reduction <maximumf>, %44, %cst_31 [1] : vector<8x8xf32> to vector<8xf32>
    %46 = vector.shape_cast %45 : vector<8xf32> to vector<8x1xf32>
    %47 = vector.broadcast %46 : vector<8x1xf32> to vector<8x8xf32>
    %48 = arith.subf %44, %47 : vector<8x8xf32>
    %49 = math.exp %48 : vector<8x8xf32>
    %cst_32 = arith.constant dense<0.000000e+00> : vector<8xf32>
    %50 = vector.multi_reduction <add>, %49, %cst_32 [1] : vector<8x8xf32> to vector<8xf32>
    %51 = vector.shape_cast %50 : vector<8xf32> to vector<8x1xf32>
    %52 = tpu.reciprocal %51 {approx = true} : vector<8x1xf32> -> vector<8x1xf32>
    %53 = vector.broadcast %52 : vector<8x1xf32> to vector<8x8xf32>
    %54 = arith.mulf %49, %53 : vector<8x8xf32>
    %cst_33 = arith.constant dense<0.000000e+00> : vector<8x4xf32>
    %55 = tpu.matmul %54, %41, %cst_33 {dimension_numbers = #tpu.dot_dimension_numbers<[1], [0], [0], [1], [0, 0, 1, 1], [], []>} : vector<8x8xf32>, vector<8x4xf32>, vector<8x4xf32> -> vector<8x4xf32>
    %c4_34 = arith.constant 4 : index
    %c0_35 = arith.constant 0 : index
    %56 = vector.load %arg5[%c4_34, %c0_35] : memref<32x32xf32, #tpu.memory_space<vmem>>, vector<4x32xf32>
    %cst_36 = arith.constant dense<0.000000e+00> : vector<8x32xf32>
    %57 = tpu.matmul %55, %56, %cst_36 {dimension_numbers = #tpu.dot_dimension_numbers<[1], [0], [0], [1], [0, 0, 1, 1], [], []>} : vector<8x4xf32>, vector<4x32xf32>, vector<8x32xf32> -> vector<8x32xf32>
    %58 = arith.addf %38, %57 : vector<8x32xf32>
    %c0_37 = arith.constant 0 : index
    %c8 = arith.constant 8 : index
    %59 = vector.load %arg18[%c0_37, %c8] : memref<16x96xf32, #tpu.memory_space<vmem>>, vector<8x4xf32>
    %c0_38 = arith.constant 0 : index
    %c40 = arith.constant 40 : index
    %60 = vector.load %arg18[%c0_38, %c40] : memref<16x96xf32, #tpu.memory_space<vmem>>, vector<8x4xf32>
    %c0_39 = arith.constant 0 : index
    %c72 = arith.constant 72 : index
    %61 = vector.load %arg18[%c0_39, %c72] : memref<16x96xf32, #tpu.memory_space<vmem>>, vector<8x4xf32>
    %cst_40 = arith.constant dense<0.000000e+00> : vector<8x8xf32>
    %62 = tpu.matmul %59, %60, %cst_40 {dimension_numbers = #tpu.dot_dimension_numbers<[1], [1], [0], [0], [0, 0, 1, 0], [], []>} : vector<8x4xf32>, vector<8x4xf32>, vector<8x8xf32> -> vector<8x8xf32>
    %cst_41 = arith.constant 5.000000e-01 : f32
    %63 = vector.broadcast %cst_41 : f32 to vector<8x8xf32>
    %64 = arith.mulf %62, %63 : vector<8x8xf32>
    %cst_42 = arith.constant dense<0xFF800000> : vector<8xf32>
    %65 = vector.multi_reduction <maximumf>, %64, %cst_42 [1] : vector<8x8xf32> to vector<8xf32>
    %66 = vector.shape_cast %65 : vector<8xf32> to vector<8x1xf32>
    %67 = vector.broadcast %66 : vector<8x1xf32> to vector<8x8xf32>
    %68 = arith.subf %64, %67 : vector<8x8xf32>
    %69 = math.exp %68 : vector<8x8xf32>
    %cst_43 = arith.constant dense<0.000000e+00> : vector<8xf32>
    %70 = vector.multi_reduction <add>, %69, %cst_43 [1] : vector<8x8xf32> to vector<8xf32>
    %71 = vector.shape_cast %70 : vector<8xf32> to vector<8x1xf32>
    %72 = tpu.reciprocal %71 {approx = true} : vector<8x1xf32> -> vector<8x1xf32>
    %73 = vector.broadcast %72 : vector<8x1xf32> to vector<8x8xf32>
    %74 = arith.mulf %69, %73 : vector<8x8xf32>
    %cst_44 = arith.constant dense<0.000000e+00> : vector<8x4xf32>
    %75 = tpu.matmul %74, %61, %cst_44 {dimension_numbers = #tpu.dot_dimension_numbers<[1], [0], [0], [1], [0, 0, 1, 1], [], []>} : vector<8x8xf32>, vector<8x4xf32>, vector<8x4xf32> -> vector<8x4xf32>
    %c8_45 = arith.constant 8 : index
    %c0_46 = arith.constant 0 : index
    %76 = vector.load %arg5[%c8_45, %c0_46] : memref<32x32xf32, #tpu.memory_space<vmem>>, vector<4x32xf32>
    %cst_47 = arith.constant dense<0.000000e+00> : vector<8x32xf32>
    %77 = tpu.matmul %75, %76, %cst_47 {dimension_numbers = #tpu.dot_dimension_numbers<[1], [0], [0], [1], [0, 0, 1, 1], [], []>} : vector<8x4xf32>, vector<4x32xf32>, vector<8x32xf32> -> vector<8x32xf32>
    %78 = arith.addf %58, %77 : vector<8x32xf32>
    %c0_48 = arith.constant 0 : index
    %c12 = arith.constant 12 : index
    %79 = vector.load %arg18[%c0_48, %c12] : memref<16x96xf32, #tpu.memory_space<vmem>>, vector<8x4xf32>
    %c0_49 = arith.constant 0 : index
    %c44 = arith.constant 44 : index
    %80 = vector.load %arg18[%c0_49, %c44] : memref<16x96xf32, #tpu.memory_space<vmem>>, vector<8x4xf32>
    %c0_50 = arith.constant 0 : index
    %c76 = arith.constant 76 : index
    %81 = vector.load %arg18[%c0_50, %c76] : memref<16x96xf32, #tpu.memory_space<vmem>>, vector<8x4xf32>
    %cst_51 = arith.constant dense<0.000000e+00> : vector<8x8xf32>
    %82 = tpu.matmul %79, %80, %cst_51 {dimension_numbers = #tpu.dot_dimension_numbers<[1], [1], [0], [0], [0, 0, 1, 0], [], []>} : vector<8x4xf32>, vector<8x4xf32>, vector<8x8xf32> -> vector<8x8xf32>
    %cst_52 = arith.constant 5.000000e-01 : f32
    %83 = vector.broadcast %cst_52 : f32 to vector<8x8xf32>
    %84 = arith.mulf %82, %83 : vector<8x8xf32>
    %cst_53 = arith.constant dense<0xFF800000> : vector<8xf32>
    %85 = vector.multi_reduction <maximumf>, %84, %cst_53 [1] : vector<8x8xf32> to vector<8xf32>
    %86 = vector.shape_cast %85 : vector<8xf32> to vector<8x1xf32>
    %87 = vector.broadcast %86 : vector<8x1xf32> to vector<8x8xf32>
    %88 = arith.subf %84, %87 : vector<8x8xf32>
    %89 = math.exp %88 : vector<8x8xf32>
    %cst_54 = arith.constant dense<0.000000e+00> : vector<8xf32>
    %90 = vector.multi_reduction <add>, %89, %cst_54 [1] : vector<8x8xf32> to vector<8xf32>
    %91 = vector.shape_cast %90 : vector<8xf32> to vector<8x1xf32>
    %92 = tpu.reciprocal %91 {approx = true} : vector<8x1xf32> -> vector<8x1xf32>
    %93 = vector.broadcast %92 : vector<8x1xf32> to vector<8x8xf32>
    %94 = arith.mulf %89, %93 : vector<8x8xf32>
    %cst_55 = arith.constant dense<0.000000e+00> : vector<8x4xf32>
    %95 = tpu.matmul %94, %81, %cst_55 {dimension_numbers = #tpu.dot_dimension_numbers<[1], [0], [0], [1], [0, 0, 1, 1], [], []>} : vector<8x8xf32>, vector<8x4xf32>, vector<8x4xf32> -> vector<8x4xf32>
    %c12_56 = arith.constant 12 : index
    %c0_57 = arith.constant 0 : index
    %96 = vector.load %arg5[%c12_56, %c0_57] : memref<32x32xf32, #tpu.memory_space<vmem>>, vector<4x32xf32>
    %cst_58 = arith.constant dense<0.000000e+00> : vector<8x32xf32>
    %97 = tpu.matmul %95, %96, %cst_58 {dimension_numbers = #tpu.dot_dimension_numbers<[1], [0], [0], [1], [0, 0, 1, 1], [], []>} : vector<8x4xf32>, vector<4x32xf32>, vector<8x32xf32> -> vector<8x32xf32>
    %98 = arith.addf %78, %97 : vector<8x32xf32>
    %c0_59 = arith.constant 0 : index
    %c16 = arith.constant 16 : index
    %99 = vector.load %arg18[%c0_59, %c16] : memref<16x96xf32, #tpu.memory_space<vmem>>, vector<8x4xf32>
    %c0_60 = arith.constant 0 : index
    %c48 = arith.constant 48 : index
    %100 = vector.load %arg18[%c0_60, %c48] : memref<16x96xf32, #tpu.memory_space<vmem>>, vector<8x4xf32>
    %c0_61 = arith.constant 0 : index
    %c80 = arith.constant 80 : index
    %101 = vector.load %arg18[%c0_61, %c80] : memref<16x96xf32, #tpu.memory_space<vmem>>, vector<8x4xf32>
    %cst_62 = arith.constant dense<0.000000e+00> : vector<8x8xf32>
    %102 = tpu.matmul %99, %100, %cst_62 {dimension_numbers = #tpu.dot_dimension_numbers<[1], [1], [0], [0], [0, 0, 1, 0], [], []>} : vector<8x4xf32>, vector<8x4xf32>, vector<8x8xf32> -> vector<8x8xf32>
    %cst_63 = arith.constant 5.000000e-01 : f32
    %103 = vector.broadcast %cst_63 : f32 to vector<8x8xf32>
    %104 = arith.mulf %102, %103 : vector<8x8xf32>
    %cst_64 = arith.constant dense<0xFF800000> : vector<8xf32>
    %105 = vector.multi_reduction <maximumf>, %104, %cst_64 [1] : vector<8x8xf32> to vector<8xf32>
    %106 = vector.shape_cast %105 : vector<8xf32> to vector<8x1xf32>
    %107 = vector.broadcast %106 : vector<8x1xf32> to vector<8x8xf32>
    %108 = arith.subf %104, %107 : vector<8x8xf32>
    %109 = math.exp %108 : vector<8x8xf32>
    %cst_65 = arith.constant dense<0.000000e+00> : vector<8xf32>
    %110 = vector.multi_reduction <add>, %109, %cst_65 [1] : vector<8x8xf32> to vector<8xf32>
    %111 = vector.shape_cast %110 : vector<8xf32> to vector<8x1xf32>
    %112 = tpu.reciprocal %111 {approx = true} : vector<8x1xf32> -> vector<8x1xf32>
    %113 = vector.broadcast %112 : vector<8x1xf32> to vector<8x8xf32>
    %114 = arith.mulf %109, %113 : vector<8x8xf32>
    %cst_66 = arith.constant dense<0.000000e+00> : vector<8x4xf32>
    %115 = tpu.matmul %114, %101, %cst_66 {dimension_numbers = #tpu.dot_dimension_numbers<[1], [0], [0], [1], [0, 0, 1, 1], [], []>} : vector<8x8xf32>, vector<8x4xf32>, vector<8x4xf32> -> vector<8x4xf32>
    %c16_67 = arith.constant 16 : index
    %c0_68 = arith.constant 0 : index
    %116 = vector.load %arg5[%c16_67, %c0_68] : memref<32x32xf32, #tpu.memory_space<vmem>>, vector<4x32xf32>
    %cst_69 = arith.constant dense<0.000000e+00> : vector<8x32xf32>
    %117 = tpu.matmul %115, %116, %cst_69 {dimension_numbers = #tpu.dot_dimension_numbers<[1], [0], [0], [1], [0, 0, 1, 1], [], []>} : vector<8x4xf32>, vector<4x32xf32>, vector<8x32xf32> -> vector<8x32xf32>
    %118 = arith.addf %98, %117 : vector<8x32xf32>
    %c0_70 = arith.constant 0 : index
    %c20 = arith.constant 20 : index
    %119 = vector.load %arg18[%c0_70, %c20] : memref<16x96xf32, #tpu.memory_space<vmem>>, vector<8x4xf32>
    %c0_71 = arith.constant 0 : index
    %c52 = arith.constant 52 : index
    %120 = vector.load %arg18[%c0_71, %c52] : memref<16x96xf32, #tpu.memory_space<vmem>>, vector<8x4xf32>
    %c0_72 = arith.constant 0 : index
    %c84 = arith.constant 84 : index
    %121 = vector.load %arg18[%c0_72, %c84] : memref<16x96xf32, #tpu.memory_space<vmem>>, vector<8x4xf32>
    %cst_73 = arith.constant dense<0.000000e+00> : vector<8x8xf32>
    %122 = tpu.matmul %119, %120, %cst_73 {dimension_numbers = #tpu.dot_dimension_numbers<[1], [1], [0], [0], [0, 0, 1, 0], [], []>} : vector<8x4xf32>, vector<8x4xf32>, vector<8x8xf32> -> vector<8x8xf32>
    %cst_74 = arith.constant 5.000000e-01 : f32
    %123 = vector.broadcast %cst_74 : f32 to vector<8x8xf32>
    %124 = arith.mulf %122, %123 : vector<8x8xf32>
    %cst_75 = arith.constant dense<0xFF800000> : vector<8xf32>
    %125 = vector.multi_reduction <maximumf>, %124, %cst_75 [1] : vector<8x8xf32> to vector<8xf32>
    %126 = vector.shape_cast %125 : vector<8xf32> to vector<8x1xf32>
    %127 = vector.broadcast %126 : vector<8x1xf32> to vector<8x8xf32>
    %128 = arith.subf %124, %127 : vector<8x8xf32>
    %129 = math.exp %128 : vector<8x8xf32>
    %cst_76 = arith.constant dense<0.000000e+00> : vector<8xf32>
    %130 = vector.multi_reduction <add>, %129, %cst_76 [1] : vector<8x8xf32> to vector<8xf32>
    %131 = vector.shape_cast %130 : vector<8xf32> to vector<8x1xf32>
    %132 = tpu.reciprocal %131 {approx = true} : vector<8x1xf32> -> vector<8x1xf32>
    %133 = vector.broadcast %132 : vector<8x1xf32> to vector<8x8xf32>
    %134 = arith.mulf %129, %133 : vector<8x8xf32>
    %cst_77 = arith.constant dense<0.000000e+00> : vector<8x4xf32>
    %135 = tpu.matmul %134, %121, %cst_77 {dimension_numbers = #tpu.dot_dimension_numbers<[1], [0], [0], [1], [0, 0, 1, 1], [], []>} : vector<8x8xf32>, vector<8x4xf32>, vector<8x4xf32> -> vector<8x4xf32>
    %c20_78 = arith.constant 20 : index
    %c0_79 = arith.constant 0 : index
    %136 = vector.load %arg5[%c20_78, %c0_79] : memref<32x32xf32, #tpu.memory_space<vmem>>, vector<4x32xf32>
    %cst_80 = arith.constant dense<0.000000e+00> : vector<8x32xf32>
    %137 = tpu.matmul %135, %136, %cst_80 {dimension_numbers = #tpu.dot_dimension_numbers<[1], [0], [0], [1], [0, 0, 1, 1], [], []>} : vector<8x4xf32>, vector<4x32xf32>, vector<8x32xf32> -> vector<8x32xf32>
    %138 = arith.addf %118, %137 : vector<8x32xf32>
    %c0_81 = arith.constant 0 : index
    %c24 = arith.constant 24 : index
    %139 = vector.load %arg18[%c0_81, %c24] : memref<16x96xf32, #tpu.memory_space<vmem>>, vector<8x4xf32>
    %c0_82 = arith.constant 0 : index
    %c56 = arith.constant 56 : index
    %140 = vector.load %arg18[%c0_82, %c56] : memref<16x96xf32, #tpu.memory_space<vmem>>, vector<8x4xf32>
    %c0_83 = arith.constant 0 : index
    %c88 = arith.constant 88 : index
    %141 = vector.load %arg18[%c0_83, %c88] : memref<16x96xf32, #tpu.memory_space<vmem>>, vector<8x4xf32>
    %cst_84 = arith.constant dense<0.000000e+00> : vector<8x8xf32>
    %142 = tpu.matmul %139, %140, %cst_84 {dimension_numbers = #tpu.dot_dimension_numbers<[1], [1], [0], [0], [0, 0, 1, 0], [], []>} : vector<8x4xf32>, vector<8x4xf32>, vector<8x8xf32> -> vector<8x8xf32>
    %cst_85 = arith.constant 5.000000e-01 : f32
    %143 = vector.broadcast %cst_85 : f32 to vector<8x8xf32>
    %144 = arith.mulf %142, %143 : vector<8x8xf32>
    %cst_86 = arith.constant dense<0xFF800000> : vector<8xf32>
    %145 = vector.multi_reduction <maximumf>, %144, %cst_86 [1] : vector<8x8xf32> to vector<8xf32>
    %146 = vector.shape_cast %145 : vector<8xf32> to vector<8x1xf32>
    %147 = vector.broadcast %146 : vector<8x1xf32> to vector<8x8xf32>
    %148 = arith.subf %144, %147 : vector<8x8xf32>
    %149 = math.exp %148 : vector<8x8xf32>
    %cst_87 = arith.constant dense<0.000000e+00> : vector<8xf32>
    %150 = vector.multi_reduction <add>, %149, %cst_87 [1] : vector<8x8xf32> to vector<8xf32>
    %151 = vector.shape_cast %150 : vector<8xf32> to vector<8x1xf32>
    %152 = tpu.reciprocal %151 {approx = true} : vector<8x1xf32> -> vector<8x1xf32>
    %153 = vector.broadcast %152 : vector<8x1xf32> to vector<8x8xf32>
    %154 = arith.mulf %149, %153 : vector<8x8xf32>
    %cst_88 = arith.constant dense<0.000000e+00> : vector<8x4xf32>
    %155 = tpu.matmul %154, %141, %cst_88 {dimension_numbers = #tpu.dot_dimension_numbers<[1], [0], [0], [1], [0, 0, 1, 1], [], []>} : vector<8x8xf32>, vector<8x4xf32>, vector<8x4xf32> -> vector<8x4xf32>
    %c24_89 = arith.constant 24 : index
    %c0_90 = arith.constant 0 : index
    %156 = vector.load %arg5[%c24_89, %c0_90] : memref<32x32xf32, #tpu.memory_space<vmem>>, vector<4x32xf32>
    %cst_91 = arith.constant dense<0.000000e+00> : vector<8x32xf32>
    %157 = tpu.matmul %155, %156, %cst_91 {dimension_numbers = #tpu.dot_dimension_numbers<[1], [0], [0], [1], [0, 0, 1, 1], [], []>} : vector<8x4xf32>, vector<4x32xf32>, vector<8x32xf32> -> vector<8x32xf32>
    %158 = arith.addf %138, %157 : vector<8x32xf32>
    %c0_92 = arith.constant 0 : index
    %c28 = arith.constant 28 : index
    %159 = vector.load %arg18[%c0_92, %c28] : memref<16x96xf32, #tpu.memory_space<vmem>>, vector<8x4xf32>
    %c0_93 = arith.constant 0 : index
    %c60 = arith.constant 60 : index
    %160 = vector.load %arg18[%c0_93, %c60] : memref<16x96xf32, #tpu.memory_space<vmem>>, vector<8x4xf32>
    %c0_94 = arith.constant 0 : index
    %c92 = arith.constant 92 : index
    %161 = vector.load %arg18[%c0_94, %c92] : memref<16x96xf32, #tpu.memory_space<vmem>>, vector<8x4xf32>
    %cst_95 = arith.constant dense<0.000000e+00> : vector<8x8xf32>
    %162 = tpu.matmul %159, %160, %cst_95 {dimension_numbers = #tpu.dot_dimension_numbers<[1], [1], [0], [0], [0, 0, 1, 0], [], []>} : vector<8x4xf32>, vector<8x4xf32>, vector<8x8xf32> -> vector<8x8xf32>
    %cst_96 = arith.constant 5.000000e-01 : f32
    %163 = vector.broadcast %cst_96 : f32 to vector<8x8xf32>
    %164 = arith.mulf %162, %163 : vector<8x8xf32>
    %cst_97 = arith.constant dense<0xFF800000> : vector<8xf32>
    %165 = vector.multi_reduction <maximumf>, %164, %cst_97 [1] : vector<8x8xf32> to vector<8xf32>
    %166 = vector.shape_cast %165 : vector<8xf32> to vector<8x1xf32>
    %167 = vector.broadcast %166 : vector<8x1xf32> to vector<8x8xf32>
    %168 = arith.subf %164, %167 : vector<8x8xf32>
    %169 = math.exp %168 : vector<8x8xf32>
    %cst_98 = arith.constant dense<0.000000e+00> : vector<8xf32>
    %170 = vector.multi_reduction <add>, %169, %cst_98 [1] : vector<8x8xf32> to vector<8xf32>
    %171 = vector.shape_cast %170 : vector<8xf32> to vector<8x1xf32>
    %172 = tpu.reciprocal %171 {approx = true} : vector<8x1xf32> -> vector<8x1xf32>
    %173 = vector.broadcast %172 : vector<8x1xf32> to vector<8x8xf32>
    %174 = arith.mulf %169, %173 : vector<8x8xf32>
    %cst_99 = arith.constant dense<0.000000e+00> : vector<8x4xf32>
    %175 = tpu.matmul %174, %161, %cst_99 {dimension_numbers = #tpu.dot_dimension_numbers<[1], [0], [0], [1], [0, 0, 1, 1], [], []>} : vector<8x8xf32>, vector<8x4xf32>, vector<8x4xf32> -> vector<8x4xf32>
    %c28_100 = arith.constant 28 : index
    %c0_101 = arith.constant 0 : index
    %176 = vector.load %arg5[%c28_100, %c0_101] : memref<32x32xf32, #tpu.memory_space<vmem>>, vector<4x32xf32>
    %cst_102 = arith.constant dense<0.000000e+00> : vector<8x32xf32>
    %177 = tpu.matmul %175, %176, %cst_102 {dimension_numbers = #tpu.dot_dimension_numbers<[1], [0], [0], [1], [0, 0, 1, 1], [], []>} : vector<8x4xf32>, vector<4x32xf32>, vector<8x32xf32> -> vector<8x32xf32>
    %178 = arith.addf %158, %177 : vector<8x32xf32>
    %cst_103 = arith.constant 0.000000e+00 : f32
    %179 = vector.broadcast %cst_103 : f32 to vector<8x32xf32>
    %c8_104 = arith.constant 8 : index
    %c0_105 = arith.constant 0 : index
    %180 = vector.load %arg18[%c8_104, %c0_105] : memref<16x96xf32, #tpu.memory_space<vmem>>, vector<8x4xf32>
    %c8_106 = arith.constant 8 : index
    %c32_107 = arith.constant 32 : index
    %181 = vector.load %arg18[%c8_106, %c32_107] : memref<16x96xf32, #tpu.memory_space<vmem>>, vector<8x4xf32>
    %c8_108 = arith.constant 8 : index
    %c64_109 = arith.constant 64 : index
    %182 = vector.load %arg18[%c8_108, %c64_109] : memref<16x96xf32, #tpu.memory_space<vmem>>, vector<8x4xf32>
    %cst_110 = arith.constant dense<0.000000e+00> : vector<8x8xf32>
    %183 = tpu.matmul %180, %181, %cst_110 {dimension_numbers = #tpu.dot_dimension_numbers<[1], [1], [0], [0], [0, 0, 1, 0], [], []>} : vector<8x4xf32>, vector<8x4xf32>, vector<8x8xf32> -> vector<8x8xf32>
    %cst_111 = arith.constant 5.000000e-01 : f32
    %184 = vector.broadcast %cst_111 : f32 to vector<8x8xf32>
    %185 = arith.mulf %183, %184 : vector<8x8xf32>
    %cst_112 = arith.constant dense<0xFF800000> : vector<8xf32>
    %186 = vector.multi_reduction <maximumf>, %185, %cst_112 [1] : vector<8x8xf32> to vector<8xf32>
    %187 = vector.shape_cast %186 : vector<8xf32> to vector<8x1xf32>
    %188 = vector.broadcast %187 : vector<8x1xf32> to vector<8x8xf32>
    %189 = arith.subf %185, %188 : vector<8x8xf32>
    %190 = math.exp %189 : vector<8x8xf32>
    %cst_113 = arith.constant dense<0.000000e+00> : vector<8xf32>
    %191 = vector.multi_reduction <add>, %190, %cst_113 [1] : vector<8x8xf32> to vector<8xf32>
    %192 = vector.shape_cast %191 : vector<8xf32> to vector<8x1xf32>
    %193 = tpu.reciprocal %192 {approx = true} : vector<8x1xf32> -> vector<8x1xf32>
    %194 = vector.broadcast %193 : vector<8x1xf32> to vector<8x8xf32>
    %195 = arith.mulf %190, %194 : vector<8x8xf32>
    %cst_114 = arith.constant dense<0.000000e+00> : vector<8x4xf32>
    %196 = tpu.matmul %195, %182, %cst_114 {dimension_numbers = #tpu.dot_dimension_numbers<[1], [0], [0], [1], [0, 0, 1, 1], [], []>} : vector<8x8xf32>, vector<8x4xf32>, vector<8x4xf32> -> vector<8x4xf32>
    %c0_115 = arith.constant 0 : index
    %c0_116 = arith.constant 0 : index
    %197 = vector.load %arg5[%c0_115, %c0_116] : memref<32x32xf32, #tpu.memory_space<vmem>>, vector<4x32xf32>
    %cst_117 = arith.constant dense<0.000000e+00> : vector<8x32xf32>
    %198 = tpu.matmul %196, %197, %cst_117 {dimension_numbers = #tpu.dot_dimension_numbers<[1], [0], [0], [1], [0, 0, 1, 1], [], []>} : vector<8x4xf32>, vector<4x32xf32>, vector<8x32xf32> -> vector<8x32xf32>
    %199 = arith.addf %179, %198 : vector<8x32xf32>
    %c8_118 = arith.constant 8 : index
    %c4_119 = arith.constant 4 : index
    %200 = vector.load %arg18[%c8_118, %c4_119] : memref<16x96xf32, #tpu.memory_space<vmem>>, vector<8x4xf32>
    %c8_120 = arith.constant 8 : index
    %c36_121 = arith.constant 36 : index
    %201 = vector.load %arg18[%c8_120, %c36_121] : memref<16x96xf32, #tpu.memory_space<vmem>>, vector<8x4xf32>
    %c8_122 = arith.constant 8 : index
    %c68_123 = arith.constant 68 : index
    %202 = vector.load %arg18[%c8_122, %c68_123] : memref<16x96xf32, #tpu.memory_space<vmem>>, vector<8x4xf32>
    %cst_124 = arith.constant dense<0.000000e+00> : vector<8x8xf32>
    %203 = tpu.matmul %200, %201, %cst_124 {dimension_numbers = #tpu.dot_dimension_numbers<[1], [1], [0], [0], [0, 0, 1, 0], [], []>} : vector<8x4xf32>, vector<8x4xf32>, vector<8x8xf32> -> vector<8x8xf32>
    %cst_125 = arith.constant 5.000000e-01 : f32
    %204 = vector.broadcast %cst_125 : f32 to vector<8x8xf32>
    %205 = arith.mulf %203, %204 : vector<8x8xf32>
    %cst_126 = arith.constant dense<0xFF800000> : vector<8xf32>
    %206 = vector.multi_reduction <maximumf>, %205, %cst_126 [1] : vector<8x8xf32> to vector<8xf32>
    %207 = vector.shape_cast %206 : vector<8xf32> to vector<8x1xf32>
    %208 = vector.broadcast %207 : vector<8x1xf32> to vector<8x8xf32>
    %209 = arith.subf %205, %208 : vector<8x8xf32>
    %210 = math.exp %209 : vector<8x8xf32>
    %cst_127 = arith.constant dense<0.000000e+00> : vector<8xf32>
    %211 = vector.multi_reduction <add>, %210, %cst_127 [1] : vector<8x8xf32> to vector<8xf32>
    %212 = vector.shape_cast %211 : vector<8xf32> to vector<8x1xf32>
    %213 = tpu.reciprocal %212 {approx = true} : vector<8x1xf32> -> vector<8x1xf32>
    %214 = vector.broadcast %213 : vector<8x1xf32> to vector<8x8xf32>
    %215 = arith.mulf %210, %214 : vector<8x8xf32>
    %cst_128 = arith.constant dense<0.000000e+00> : vector<8x4xf32>
    %216 = tpu.matmul %215, %202, %cst_128 {dimension_numbers = #tpu.dot_dimension_numbers<[1], [0], [0], [1], [0, 0, 1, 1], [], []>} : vector<8x8xf32>, vector<8x4xf32>, vector<8x4xf32> -> vector<8x4xf32>
    %c4_129 = arith.constant 4 : index
    %c0_130 = arith.constant 0 : index
    %217 = vector.load %arg5[%c4_129, %c0_130] : memref<32x32xf32, #tpu.memory_space<vmem>>, vector<4x32xf32>
    %cst_131 = arith.constant dense<0.000000e+00> : vector<8x32xf32>
    %218 = tpu.matmul %216, %217, %cst_131 {dimension_numbers = #tpu.dot_dimension_numbers<[1], [0], [0], [1], [0, 0, 1, 1], [], []>} : vector<8x4xf32>, vector<4x32xf32>, vector<8x32xf32> -> vector<8x32xf32>
    %219 = arith.addf %199, %218 : vector<8x32xf32>
    %c8_132 = arith.constant 8 : index
    %c8_133 = arith.constant 8 : index
    %220 = vector.load %arg18[%c8_132, %c8_133] : memref<16x96xf32, #tpu.memory_space<vmem>>, vector<8x4xf32>
    %c8_134 = arith.constant 8 : index
    %c40_135 = arith.constant 40 : index
    %221 = vector.load %arg18[%c8_134, %c40_135] : memref<16x96xf32, #tpu.memory_space<vmem>>, vector<8x4xf32>
    %c8_136 = arith.constant 8 : index
    %c72_137 = arith.constant 72 : index
    %222 = vector.load %arg18[%c8_136, %c72_137] : memref<16x96xf32, #tpu.memory_space<vmem>>, vector<8x4xf32>
    %cst_138 = arith.constant dense<0.000000e+00> : vector<8x8xf32>
    %223 = tpu.matmul %220, %221, %cst_138 {dimension_numbers = #tpu.dot_dimension_numbers<[1], [1], [0], [0], [0, 0, 1, 0], [], []>} : vector<8x4xf32>, vector<8x4xf32>, vector<8x8xf32> -> vector<8x8xf32>
    %cst_139 = arith.constant 5.000000e-01 : f32
    %224 = vector.broadcast %cst_139 : f32 to vector<8x8xf32>
    %225 = arith.mulf %223, %224 : vector<8x8xf32>
    %cst_140 = arith.constant dense<0xFF800000> : vector<8xf32>
    %226 = vector.multi_reduction <maximumf>, %225, %cst_140 [1] : vector<8x8xf32> to vector<8xf32>
    %227 = vector.shape_cast %226 : vector<8xf32> to vector<8x1xf32>
    %228 = vector.broadcast %227 : vector<8x1xf32> to vector<8x8xf32>
    %229 = arith.subf %225, %228 : vector<8x8xf32>
    %230 = math.exp %229 : vector<8x8xf32>
    %cst_141 = arith.constant dense<0.000000e+00> : vector<8xf32>
    %231 = vector.multi_reduction <add>, %230, %cst_141 [1] : vector<8x8xf32> to vector<8xf32>
    %232 = vector.shape_cast %231 : vector<8xf32> to vector<8x1xf32>
    %233 = tpu.reciprocal %232 {approx = true} : vector<8x1xf32> -> vector<8x1xf32>
    %234 = vector.broadcast %233 : vector<8x1xf32> to vector<8x8xf32>
    %235 = arith.mulf %230, %234 : vector<8x8xf32>
    %cst_142 = arith.constant dense<0.000000e+00> : vector<8x4xf32>
    %236 = tpu.matmul %235, %222, %cst_142 {dimension_numbers = #tpu.dot_dimension_numbers<[1], [0], [0], [1], [0, 0, 1, 1], [], []>} : vector<8x8xf32>, vector<8x4xf32>, vector<8x4xf32> -> vector<8x4xf32>
    %c8_143 = arith.constant 8 : index
    %c0_144 = arith.constant 0 : index
    %237 = vector.load %arg5[%c8_143, %c0_144] : memref<32x32xf32, #tpu.memory_space<vmem>>, vector<4x32xf32>
    %cst_145 = arith.constant dense<0.000000e+00> : vector<8x32xf32>
    %238 = tpu.matmul %236, %237, %cst_145 {dimension_numbers = #tpu.dot_dimension_numbers<[1], [0], [0], [1], [0, 0, 1, 1], [], []>} : vector<8x4xf32>, vector<4x32xf32>, vector<8x32xf32> -> vector<8x32xf32>
    %239 = arith.addf %219, %238 : vector<8x32xf32>
    %c8_146 = arith.constant 8 : index
    %c12_147 = arith.constant 12 : index
    %240 = vector.load %arg18[%c8_146, %c12_147] : memref<16x96xf32, #tpu.memory_space<vmem>>, vector<8x4xf32>
    %c8_148 = arith.constant 8 : index
    %c44_149 = arith.constant 44 : index
    %241 = vector.load %arg18[%c8_148, %c44_149] : memref<16x96xf32, #tpu.memory_space<vmem>>, vector<8x4xf32>
    %c8_150 = arith.constant 8 : index
    %c76_151 = arith.constant 76 : index
    %242 = vector.load %arg18[%c8_150, %c76_151] : memref<16x96xf32, #tpu.memory_space<vmem>>, vector<8x4xf32>
    %cst_152 = arith.constant dense<0.000000e+00> : vector<8x8xf32>
    %243 = tpu.matmul %240, %241, %cst_152 {dimension_numbers = #tpu.dot_dimension_numbers<[1], [1], [0], [0], [0, 0, 1, 0], [], []>} : vector<8x4xf32>, vector<8x4xf32>, vector<8x8xf32> -> vector<8x8xf32>
    %cst_153 = arith.constant 5.000000e-01 : f32
    %244 = vector.broadcast %cst_153 : f32 to vector<8x8xf32>
    %245 = arith.mulf %243, %244 : vector<8x8xf32>
    %cst_154 = arith.constant dense<0xFF800000> : vector<8xf32>
    %246 = vector.multi_reduction <maximumf>, %245, %cst_154 [1] : vector<8x8xf32> to vector<8xf32>
    %247 = vector.shape_cast %246 : vector<8xf32> to vector<8x1xf32>
    %248 = vector.broadcast %247 : vector<8x1xf32> to vector<8x8xf32>
    %249 = arith.subf %245, %248 : vector<8x8xf32>
    %250 = math.exp %249 : vector<8x8xf32>
    %cst_155 = arith.constant dense<0.000000e+00> : vector<8xf32>
    %251 = vector.multi_reduction <add>, %250, %cst_155 [1] : vector<8x8xf32> to vector<8xf32>
    %252 = vector.shape_cast %251 : vector<8xf32> to vector<8x1xf32>
    %253 = tpu.reciprocal %252 {approx = true} : vector<8x1xf32> -> vector<8x1xf32>
    %254 = vector.broadcast %253 : vector<8x1xf32> to vector<8x8xf32>
    %255 = arith.mulf %250, %254 : vector<8x8xf32>
    %cst_156 = arith.constant dense<0.000000e+00> : vector<8x4xf32>
    %256 = tpu.matmul %255, %242, %cst_156 {dimension_numbers = #tpu.dot_dimension_numbers<[1], [0], [0], [1], [0, 0, 1, 1], [], []>} : vector<8x8xf32>, vector<8x4xf32>, vector<8x4xf32> -> vector<8x4xf32>
    %c12_157 = arith.constant 12 : index
    %c0_158 = arith.constant 0 : index
    %257 = vector.load %arg5[%c12_157, %c0_158] : memref<32x32xf32, #tpu.memory_space<vmem>>, vector<4x32xf32>
    %cst_159 = arith.constant dense<0.000000e+00> : vector<8x32xf32>
    %258 = tpu.matmul %256, %257, %cst_159 {dimension_numbers = #tpu.dot_dimension_numbers<[1], [0], [0], [1], [0, 0, 1, 1], [], []>} : vector<8x4xf32>, vector<4x32xf32>, vector<8x32xf32> -> vector<8x32xf32>
    %259 = arith.addf %239, %258 : vector<8x32xf32>
    %c8_160 = arith.constant 8 : index
    %c16_161 = arith.constant 16 : index
    %260 = vector.load %arg18[%c8_160, %c16_161] : memref<16x96xf32, #tpu.memory_space<vmem>>, vector<8x4xf32>
    %c8_162 = arith.constant 8 : index
    %c48_163 = arith.constant 48 : index
    %261 = vector.load %arg18[%c8_162, %c48_163] : memref<16x96xf32, #tpu.memory_space<vmem>>, vector<8x4xf32>
    %c8_164 = arith.constant 8 : index
    %c80_165 = arith.constant 80 : index
    %262 = vector.load %arg18[%c8_164, %c80_165] : memref<16x96xf32, #tpu.memory_space<vmem>>, vector<8x4xf32>
    %cst_166 = arith.constant dense<0.000000e+00> : vector<8x8xf32>
    %263 = tpu.matmul %260, %261, %cst_166 {dimension_numbers = #tpu.dot_dimension_numbers<[1], [1], [0], [0], [0, 0, 1, 0], [], []>} : vector<8x4xf32>, vector<8x4xf32>, vector<8x8xf32> -> vector<8x8xf32>
    %cst_167 = arith.constant 5.000000e-01 : f32
    %264 = vector.broadcast %cst_167 : f32 to vector<8x8xf32>
    %265 = arith.mulf %263, %264 : vector<8x8xf32>
    %cst_168 = arith.constant dense<0xFF800000> : vector<8xf32>
    %266 = vector.multi_reduction <maximumf>, %265, %cst_168 [1] : vector<8x8xf32> to vector<8xf32>
    %267 = vector.shape_cast %266 : vector<8xf32> to vector<8x1xf32>
    %268 = vector.broadcast %267 : vector<8x1xf32> to vector<8x8xf32>
    %269 = arith.subf %265, %268 : vector<8x8xf32>
    %270 = math.exp %269 : vector<8x8xf32>
    %cst_169 = arith.constant dense<0.000000e+00> : vector<8xf32>
    %271 = vector.multi_reduction <add>, %270, %cst_169 [1] : vector<8x8xf32> to vector<8xf32>
    %272 = vector.shape_cast %271 : vector<8xf32> to vector<8x1xf32>
    %273 = tpu.reciprocal %272 {approx = true} : vector<8x1xf32> -> vector<8x1xf32>
    %274 = vector.broadcast %273 : vector<8x1xf32> to vector<8x8xf32>
    %275 = arith.mulf %270, %274 : vector<8x8xf32>
    %cst_170 = arith.constant dense<0.000000e+00> : vector<8x4xf32>
    %276 = tpu.matmul %275, %262, %cst_170 {dimension_numbers = #tpu.dot_dimension_numbers<[1], [0], [0], [1], [0, 0, 1, 1], [], []>} : vector<8x8xf32>, vector<8x4xf32>, vector<8x4xf32> -> vector<8x4xf32>
    %c16_171 = arith.constant 16 : index
    %c0_172 = arith.constant 0 : index
    %277 = vector.load %arg5[%c16_171, %c0_172] : memref<32x32xf32, #tpu.memory_space<vmem>>, vector<4x32xf32>
    %cst_173 = arith.constant dense<0.000000e+00> : vector<8x32xf32>
    %278 = tpu.matmul %276, %277, %cst_173 {dimension_numbers = #tpu.dot_dimension_numbers<[1], [0], [0], [1], [0, 0, 1, 1], [], []>} : vector<8x4xf32>, vector<4x32xf32>, vector<8x32xf32> -> vector<8x32xf32>
    %279 = arith.addf %259, %278 : vector<8x32xf32>
    %c8_174 = arith.constant 8 : index
    %c20_175 = arith.constant 20 : index
    %280 = vector.load %arg18[%c8_174, %c20_175] : memref<16x96xf32, #tpu.memory_space<vmem>>, vector<8x4xf32>
    %c8_176 = arith.constant 8 : index
    %c52_177 = arith.constant 52 : index
    %281 = vector.load %arg18[%c8_176, %c52_177] : memref<16x96xf32, #tpu.memory_space<vmem>>, vector<8x4xf32>
    %c8_178 = arith.constant 8 : index
    %c84_179 = arith.constant 84 : index
    %282 = vector.load %arg18[%c8_178, %c84_179] : memref<16x96xf32, #tpu.memory_space<vmem>>, vector<8x4xf32>
    %cst_180 = arith.constant dense<0.000000e+00> : vector<8x8xf32>
    %283 = tpu.matmul %280, %281, %cst_180 {dimension_numbers = #tpu.dot_dimension_numbers<[1], [1], [0], [0], [0, 0, 1, 0], [], []>} : vector<8x4xf32>, vector<8x4xf32>, vector<8x8xf32> -> vector<8x8xf32>
    %cst_181 = arith.constant 5.000000e-01 : f32
    %284 = vector.broadcast %cst_181 : f32 to vector<8x8xf32>
    %285 = arith.mulf %283, %284 : vector<8x8xf32>
    %cst_182 = arith.constant dense<0xFF800000> : vector<8xf32>
    %286 = vector.multi_reduction <maximumf>, %285, %cst_182 [1] : vector<8x8xf32> to vector<8xf32>
    %287 = vector.shape_cast %286 : vector<8xf32> to vector<8x1xf32>
    %288 = vector.broadcast %287 : vector<8x1xf32> to vector<8x8xf32>
    %289 = arith.subf %285, %288 : vector<8x8xf32>
    %290 = math.exp %289 : vector<8x8xf32>
    %cst_183 = arith.constant dense<0.000000e+00> : vector<8xf32>
    %291 = vector.multi_reduction <add>, %290, %cst_183 [1] : vector<8x8xf32> to vector<8xf32>
    %292 = vector.shape_cast %291 : vector<8xf32> to vector<8x1xf32>
    %293 = tpu.reciprocal %292 {approx = true} : vector<8x1xf32> -> vector<8x1xf32>
    %294 = vector.broadcast %293 : vector<8x1xf32> to vector<8x8xf32>
    %295 = arith.mulf %290, %294 : vector<8x8xf32>
    %cst_184 = arith.constant dense<0.000000e+00> : vector<8x4xf32>
    %296 = tpu.matmul %295, %282, %cst_184 {dimension_numbers = #tpu.dot_dimension_numbers<[1], [0], [0], [1], [0, 0, 1, 1], [], []>} : vector<8x8xf32>, vector<8x4xf32>, vector<8x4xf32> -> vector<8x4xf32>
    %c20_185 = arith.constant 20 : index
    %c0_186 = arith.constant 0 : index
    %297 = vector.load %arg5[%c20_185, %c0_186] : memref<32x32xf32, #tpu.memory_space<vmem>>, vector<4x32xf32>
    %cst_187 = arith.constant dense<0.000000e+00> : vector<8x32xf32>
    %298 = tpu.matmul %296, %297, %cst_187 {dimension_numbers = #tpu.dot_dimension_numbers<[1], [0], [0], [1], [0, 0, 1, 1], [], []>} : vector<8x4xf32>, vector<4x32xf32>, vector<8x32xf32> -> vector<8x32xf32>
    %299 = arith.addf %279, %298 : vector<8x32xf32>
    %c8_188 = arith.constant 8 : index
    %c24_189 = arith.constant 24 : index
    %300 = vector.load %arg18[%c8_188, %c24_189] : memref<16x96xf32, #tpu.memory_space<vmem>>, vector<8x4xf32>
    %c8_190 = arith.constant 8 : index
    %c56_191 = arith.constant 56 : index
    %301 = vector.load %arg18[%c8_190, %c56_191] : memref<16x96xf32, #tpu.memory_space<vmem>>, vector<8x4xf32>
    %c8_192 = arith.constant 8 : index
    %c88_193 = arith.constant 88 : index
    %302 = vector.load %arg18[%c8_192, %c88_193] : memref<16x96xf32, #tpu.memory_space<vmem>>, vector<8x4xf32>
    %cst_194 = arith.constant dense<0.000000e+00> : vector<8x8xf32>
    %303 = tpu.matmul %300, %301, %cst_194 {dimension_numbers = #tpu.dot_dimension_numbers<[1], [1], [0], [0], [0, 0, 1, 0], [], []>} : vector<8x4xf32>, vector<8x4xf32>, vector<8x8xf32> -> vector<8x8xf32>
    %cst_195 = arith.constant 5.000000e-01 : f32
    %304 = vector.broadcast %cst_195 : f32 to vector<8x8xf32>
    %305 = arith.mulf %303, %304 : vector<8x8xf32>
    %cst_196 = arith.constant dense<0xFF800000> : vector<8xf32>
    %306 = vector.multi_reduction <maximumf>, %305, %cst_196 [1] : vector<8x8xf32> to vector<8xf32>
    %307 = vector.shape_cast %306 : vector<8xf32> to vector<8x1xf32>
    %308 = vector.broadcast %307 : vector<8x1xf32> to vector<8x8xf32>
    %309 = arith.subf %305, %308 : vector<8x8xf32>
    %310 = math.exp %309 : vector<8x8xf32>
    %cst_197 = arith.constant dense<0.000000e+00> : vector<8xf32>
    %311 = vector.multi_reduction <add>, %310, %cst_197 [1] : vector<8x8xf32> to vector<8xf32>
    %312 = vector.shape_cast %311 : vector<8xf32> to vector<8x1xf32>
    %313 = tpu.reciprocal %312 {approx = true} : vector<8x1xf32> -> vector<8x1xf32>
    %314 = vector.broadcast %313 : vector<8x1xf32> to vector<8x8xf32>
    %315 = arith.mulf %310, %314 : vector<8x8xf32>
    %cst_198 = arith.constant dense<0.000000e+00> : vector<8x4xf32>
    %316 = tpu.matmul %315, %302, %cst_198 {dimension_numbers = #tpu.dot_dimension_numbers<[1], [0], [0], [1], [0, 0, 1, 1], [], []>} : vector<8x8xf32>, vector<8x4xf32>, vector<8x4xf32> -> vector<8x4xf32>
    %c24_199 = arith.constant 24 : index
    %c0_200 = arith.constant 0 : index
    %317 = vector.load %arg5[%c24_199, %c0_200] : memref<32x32xf32, #tpu.memory_space<vmem>>, vector<4x32xf32>
    %cst_201 = arith.constant dense<0.000000e+00> : vector<8x32xf32>
    %318 = tpu.matmul %316, %317, %cst_201 {dimension_numbers = #tpu.dot_dimension_numbers<[1], [0], [0], [1], [0, 0, 1, 1], [], []>} : vector<8x4xf32>, vector<4x32xf32>, vector<8x32xf32> -> vector<8x32xf32>
    %319 = arith.addf %299, %318 : vector<8x32xf32>
    %c8_202 = arith.constant 8 : index
    %c28_203 = arith.constant 28 : index
    %320 = vector.load %arg18[%c8_202, %c28_203] : memref<16x96xf32, #tpu.memory_space<vmem>>, vector<8x4xf32>
    %c8_204 = arith.constant 8 : index
    %c60_205 = arith.constant 60 : index
    %321 = vector.load %arg18[%c8_204, %c60_205] : memref<16x96xf32, #tpu.memory_space<vmem>>, vector<8x4xf32>
    %c8_206 = arith.constant 8 : index
    %c92_207 = arith.constant 92 : index
    %322 = vector.load %arg18[%c8_206, %c92_207] : memref<16x96xf32, #tpu.memory_space<vmem>>, vector<8x4xf32>
    %cst_208 = arith.constant dense<0.000000e+00> : vector<8x8xf32>
    %323 = tpu.matmul %320, %321, %cst_208 {dimension_numbers = #tpu.dot_dimension_numbers<[1], [1], [0], [0], [0, 0, 1, 0], [], []>} : vector<8x4xf32>, vector<8x4xf32>, vector<8x8xf32> -> vector<8x8xf32>
    %cst_209 = arith.constant 5.000000e-01 : f32
    %324 = vector.broadcast %cst_209 : f32 to vector<8x8xf32>
    %325 = arith.mulf %323, %324 : vector<8x8xf32>
    %cst_210 = arith.constant dense<0xFF800000> : vector<8xf32>
    %326 = vector.multi_reduction <maximumf>, %325, %cst_210 [1] : vector<8x8xf32> to vector<8xf32>
    %327 = vector.shape_cast %326 : vector<8xf32> to vector<8x1xf32>
    %328 = vector.broadcast %327 : vector<8x1xf32> to vector<8x8xf32>
    %329 = arith.subf %325, %328 : vector<8x8xf32>
    %330 = math.exp %329 : vector<8x8xf32>
    %cst_211 = arith.constant dense<0.000000e+00> : vector<8xf32>
    %331 = vector.multi_reduction <add>, %330, %cst_211 [1] : vector<8x8xf32> to vector<8xf32>
    %332 = vector.shape_cast %331 : vector<8xf32> to vector<8x1xf32>
    %333 = tpu.reciprocal %332 {approx = true} : vector<8x1xf32> -> vector<8x1xf32>
    %334 = vector.broadcast %333 : vector<8x1xf32> to vector<8x8xf32>
    %335 = arith.mulf %330, %334 : vector<8x8xf32>
    %cst_212 = arith.constant dense<0.000000e+00> : vector<8x4xf32>
    %336 = tpu.matmul %335, %322, %cst_212 {dimension_numbers = #tpu.dot_dimension_numbers<[1], [0], [0], [1], [0, 0, 1, 1], [], []>} : vector<8x8xf32>, vector<8x4xf32>, vector<8x4xf32> -> vector<8x4xf32>
    %c28_213 = arith.constant 28 : index
    %c0_214 = arith.constant 0 : index
    %337 = vector.load %arg5[%c28_213, %c0_214] : memref<32x32xf32, #tpu.memory_space<vmem>>, vector<4x32xf32>
    %cst_215 = arith.constant dense<0.000000e+00> : vector<8x32xf32>
    %338 = tpu.matmul %336, %337, %cst_215 {dimension_numbers = #tpu.dot_dimension_numbers<[1], [0], [0], [1], [0, 0, 1, 1], [], []>} : vector<8x4xf32>, vector<4x32xf32>, vector<8x32xf32> -> vector<8x32xf32>
    %339 = arith.addf %319, %338 : vector<8x32xf32>
    %340 = tpu.concatenate %178, %339 in 0 : vector<8x32xf32>, vector<8x32xf32> -> vector<16x32xf32>
    %c0_216 = arith.constant 0 : index
    %c0_217 = arith.constant 0 : index
    %341 = vector.load %arg6[%c0_216, %c0_217] : memref<1x32xf32, #tpu.memory_space<vmem>>, vector<1x32xf32>
    %342 = vector.broadcast %341 : vector<1x32xf32> to vector<16x32xf32>
    %343 = arith.addf %340, %342 : vector<16x32xf32>
    %344 = arith.addf %11, %343 : vector<16x32xf32>
    %c0_218 = arith.constant 0 : index
    %c0_219 = arith.constant 0 : index
    %345 = vector.load %arg7[%c0_218, %c0_219] : memref<1x32xf32, #tpu.memory_space<vmem>>, vector<1x32xf32>
    %c0_220 = arith.constant 0 : index
    %c0_221 = arith.constant 0 : index
    %346 = vector.load %arg8[%c0_220, %c0_221] : memref<1x32xf32, #tpu.memory_space<vmem>>, vector<1x32xf32>
    %cst_222 = arith.constant dense<0.000000e+00> : vector<16xf32>
    %347 = vector.multi_reduction <add>, %344, %cst_222 [1] : vector<16x32xf32> to vector<16xf32>
    %348 = vector.shape_cast %347 : vector<16xf32> to vector<16x1xf32>
    %cst_223 = arith.constant 3.200000e+01 : f32
    %349 = vector.broadcast %cst_223 : f32 to vector<16x1xf32>
    %350 = arith.divf %348, %349 : vector<16x1xf32>
    %351 = vector.broadcast %350 : vector<16x1xf32> to vector<16x32xf32>
    %352 = arith.subf %344, %351 : vector<16x32xf32>
    %353 = arith.mulf %352, %352 : vector<16x32xf32>
    %cst_224 = arith.constant dense<0.000000e+00> : vector<16xf32>
    %354 = vector.multi_reduction <add>, %353, %cst_224 [1] : vector<16x32xf32> to vector<16xf32>
    %355 = vector.shape_cast %354 : vector<16xf32> to vector<16x1xf32>
    %cst_225 = arith.constant 3.200000e+01 : f32
    %356 = vector.broadcast %cst_225 : f32 to vector<16x1xf32>
    %357 = arith.divf %355, %356 : vector<16x1xf32>
    %cst_226 = arith.constant 9.99999974E-6 : f32
    %358 = vector.broadcast %cst_226 : f32 to vector<16x1xf32>
    %359 = arith.addf %357, %358 : vector<16x1xf32>
    %360 = math.rsqrt %359 : vector<16x1xf32>
    %361 = vector.broadcast %360 : vector<16x1xf32> to vector<16x32xf32>
    %362 = arith.mulf %352, %361 : vector<16x32xf32>
    %363 = vector.broadcast %345 : vector<1x32xf32> to vector<16x32xf32>
    %364 = arith.mulf %362, %363 : vector<16x32xf32>
    %365 = vector.broadcast %346 : vector<1x32xf32> to vector<16x32xf32>
    %366 = arith.addf %364, %365 : vector<16x32xf32>
    %c0_227 = arith.constant 0 : index
    %c0_228 = arith.constant 0 : index
    %367 = vector.load %arg9[%c0_227, %c0_228] : memref<32x128xf32, #tpu.memory_space<vmem>>, vector<32x128xf32>
    %cst_229 = arith.constant dense<0.000000e+00> : vector<16x128xf32>
    %368 = tpu.matmul %366, %367, %cst_229 {dimension_numbers = #tpu.dot_dimension_numbers<[1], [0], [0], [1], [0, 0, 1, 1], [], []>} : vector<16x32xf32>, vector<32x128xf32>, vector<16x128xf32> -> vector<16x128xf32>
    %c0_230 = arith.constant 0 : index
    %c0_231 = arith.constant 0 : index
    %369 = vector.load %arg10[%c0_230, %c0_231] : memref<1x128xf32, #tpu.memory_space<vmem>>, vector<1x128xf32>
    %370 = vector.broadcast %369 : vector<1x128xf32> to vector<16x128xf32>
    %371 = arith.addf %368, %370 : vector<16x128xf32>
    %cst_232 = arith.constant 0.000000e+00 : f32
    %372 = vector.broadcast %cst_232 : f32 to vector<16x128xf32>
    %373 = arith.maximumf %371, %372 : vector<16x128xf32>
    %c0_233 = arith.constant 0 : index
    %c0_234 = arith.constant 0 : index
    %374 = vector.load %arg11[%c0_233, %c0_234] : memref<128x32xf32, #tpu.memory_space<vmem>>, vector<128x32xf32>
    %cst_235 = arith.constant dense<0.000000e+00> : vector<16x32xf32>
    %375 = tpu.matmul %373, %374, %cst_235 {dimension_numbers = #tpu.dot_dimension_numbers<[1], [0], [0], [1], [0, 0, 1, 1], [], []>} : vector<16x128xf32>, vector<128x32xf32>, vector<16x32xf32> -> vector<16x32xf32>
    %c0_236 = arith.constant 0 : index
    %c0_237 = arith.constant 0 : index
    %376 = vector.load %arg12[%c0_236, %c0_237] : memref<1x32xf32, #tpu.memory_space<vmem>>, vector<1x32xf32>
    %377 = vector.broadcast %376 : vector<1x32xf32> to vector<16x32xf32>
    %378 = arith.addf %375, %377 : vector<16x32xf32>
    %379 = arith.addf %366, %378 : vector<16x32xf32>
    %c0_238 = arith.constant 0 : index
    %c0_239 = arith.constant 0 : index
    %380 = vector.load %arg13[%c0_238, %c0_239] : memref<1x32xf32, #tpu.memory_space<vmem>>, vector<1x32xf32>
    %c0_240 = arith.constant 0 : index
    %c0_241 = arith.constant 0 : index
    %381 = vector.load %arg14[%c0_240, %c0_241] : memref<1x32xf32, #tpu.memory_space<vmem>>, vector<1x32xf32>
    %cst_242 = arith.constant dense<0.000000e+00> : vector<16xf32>
    %382 = vector.multi_reduction <add>, %379, %cst_242 [1] : vector<16x32xf32> to vector<16xf32>
    %383 = vector.shape_cast %382 : vector<16xf32> to vector<16x1xf32>
    %cst_243 = arith.constant 3.200000e+01 : f32
    %384 = vector.broadcast %cst_243 : f32 to vector<16x1xf32>
    %385 = arith.divf %383, %384 : vector<16x1xf32>
    %386 = vector.broadcast %385 : vector<16x1xf32> to vector<16x32xf32>
    %387 = arith.subf %379, %386 : vector<16x32xf32>
    %388 = arith.mulf %387, %387 : vector<16x32xf32>
    %cst_244 = arith.constant dense<0.000000e+00> : vector<16xf32>
    %389 = vector.multi_reduction <add>, %388, %cst_244 [1] : vector<16x32xf32> to vector<16xf32>
    %390 = vector.shape_cast %389 : vector<16xf32> to vector<16x1xf32>
    %cst_245 = arith.constant 3.200000e+01 : f32
    %391 = vector.broadcast %cst_245 : f32 to vector<16x1xf32>
    %392 = arith.divf %390, %391 : vector<16x1xf32>
    %cst_246 = arith.constant 9.99999974E-6 : f32
    %393 = vector.broadcast %cst_246 : f32 to vector<16x1xf32>
    %394 = arith.addf %392, %393 : vector<16x1xf32>
    %395 = math.rsqrt %394 : vector<16x1xf32>
    %396 = vector.broadcast %395 : vector<16x1xf32> to vector<16x32xf32>
    %397 = arith.mulf %387, %396 : vector<16x32xf32>
    %398 = vector.broadcast %380 : vector<1x32xf32> to vector<16x32xf32>
    %399 = arith.mulf %397, %398 : vector<16x32xf32>
    %400 = vector.broadcast %381 : vector<1x32xf32> to vector<16x32xf32>
    %401 = arith.addf %399, %400 : vector<16x32xf32>
    %402 = vector.extract_strided_slice %401 {offsets = [0, 0], sizes = [8, 32], strides = [1, 1]} : vector<16x32xf32> to vector<8x32xf32>
    %cst_247 = arith.constant dense<0.000000e+00> : vector<32xf32>
    %403 = vector.multi_reduction <add>, %402, %cst_247 [0] : vector<8x32xf32> to vector<32xf32>
    %404 = vector.shape_cast %403 : vector<32xf32> to vector<1x32xf32>
    %cst_248 = arith.constant 8.000000e+00 : f32
    %405 = vector.broadcast %cst_248 : f32 to vector<1x32xf32>
    %406 = arith.divf %404, %405 : vector<1x32xf32>
    %407 = vector.extract_strided_slice %401 {offsets = [8, 0], sizes = [8, 32], strides = [1, 1]} : vector<16x32xf32> to vector<8x32xf32>
    %cst_249 = arith.constant dense<0.000000e+00> : vector<32xf32>
    %408 = vector.multi_reduction <add>, %407, %cst_249 [0] : vector<8x32xf32> to vector<32xf32>
    %409 = vector.shape_cast %408 : vector<32xf32> to vector<1x32xf32>
    %cst_250 = arith.constant 8.000000e+00 : f32
    %410 = vector.broadcast %cst_250 : f32 to vector<1x32xf32>
    %411 = arith.divf %409, %410 : vector<1x32xf32>
    %412 = tpu.concatenate %406, %411 in 0 : vector<1x32xf32>, vector<1x32xf32> -> vector<2x32xf32>
    %c0_251 = arith.constant 0 : index
    %c0_252 = arith.constant 0 : index
    %413 = vector.load %arg15[%c0_251, %c0_252] : memref<32x1xf32, #tpu.memory_space<vmem>>, vector<32x1xf32>
    %cst_253 = arith.constant dense<0.000000e+00> : vector<2x1xf32>
    %414 = tpu.matmul %412, %413, %cst_253 {dimension_numbers = #tpu.dot_dimension_numbers<[1], [0], [0], [1], [0, 0, 1, 1], [], []>} : vector<2x32xf32>, vector<32x1xf32>, vector<2x1xf32> -> vector<2x1xf32>
    %c0_254 = arith.constant 0 : index
    %c0_255 = arith.constant 0 : index
    %415 = vector.load %arg16[%c0_254, %c0_255] : memref<1x1xf32, #tpu.memory_space<vmem>>, vector<1x1xf32>
    %416 = vector.broadcast %415 : vector<1x1xf32> to vector<2x1xf32>
    %417 = arith.addf %414, %416 : vector<2x1xf32>
    %cst_256 = arith.constant 0.000000e+00 : f32
    %418 = vector.broadcast %cst_256 : f32 to vector<2x1xf32>
    %419 = arith.subf %418, %417 : vector<2x1xf32>
    %420 = math.exp %419 : vector<2x1xf32>
    %cst_257 = arith.constant 1.000000e+00 : f32
    %421 = vector.broadcast %cst_257 : f32 to vector<2x1xf32>
    %422 = arith.addf %421, %420 : vector<2x1xf32>
    %cst_258 = arith.constant 1.000000e+00 : f32
    %423 = vector.broadcast %cst_258 : f32 to vector<2x1xf32>
    %424 = arith.divf %423, %422 : vector<2x1xf32>
    %c0_259 = arith.constant 0 : index
    %c0_260 = arith.constant 0 : index
    %425 = vector.load %arg17[%c0_259, %c0_260] : memref<2x1xf32, #tpu.memory_space<vmem>>, vector<2x1xf32>
    tpu.vector_store %arg17[%c0_259, %c0_260], %424 {strides = array<i32>} : memref<2x1xf32, #tpu.memory_space<vmem>>, vector<2x1xf32>,
    return
  }
}

</mosaic_0001>

<bundles_post_ra>
// kernel: transformer_classification_forward.1
= control target key start
LH: loop header
LB: loop body
LE: loop exit
PB: predicated region body
PF: predicated region fallthrough
CT: control target
= control target key end

     0   :  { %s2900_s0 = inlined_call_operand.vmem [shape: s32[16,1], index: 0, kind: input, shape index: {}]   ;;  %s2901_s1 = inlined_call_operand.hbm [shape: f32[100,32], index: 1, kind: input, shape index: {}]   ;;  %s2902_s2 = inlined_call_operand.vmem [shape: f32[16,32], index: 2, kind: input, shape index: {}]   ;;  %s2903_s3 = inlined_call_operand.hbm [shape: f32[32,96], index: 3, kind: input, shape index: {}]   ;;  %s2904_s4 = inlined_call_operand.vmem [shape: f32[1,96], index: 4, kind: input, shape index: {}]   ;;  %s2905_s5 = inlined_call_operand.hbm [shape: f32[32,32], index: 5, kind: input, shape index: {}]   ;;  %s2906_s6 = inlined_call_operand.vmem [shape: f32[1,32], index: 6, kind: input, shape index: {}]   ;;  %s2907_s7 = inlined_call_operand.vmem [shape: f32[1,32], index: 7, kind: input, shape index: {}, may-alias: {7,13}]   ;;  %s2908_s8 = inlined_call_operand.vmem [shape: f32[1,32], index: 8, kind: input, shape index: {}, may-alias: {8,14}]   ;;  %s2909_s9 = inlined_call_operand.hbm [shape: f32[32,128], index: 9, kind: input, shape index: {}]   ;;  %s2910_s10 = inlined_call_operand.vmem [shape: f32[1,128], index: 10, kind: input, shape index: {}]   ;;  %s2911_s11 = inlined_call_operand.vmem [shape: f32[128,32], index: 11, kind: input, shape index: {}]   ;;  %s2912_s12 = inlined_call_operand.vmem [shape: f32[1,32], index: 12, kind: input, shape index: {}]   ;;  %s2913_s13 = inlined_call_operand.vmem [shape: f32[1,32], index: 13, kind: input, shape index: {}, may-alias: {7,13}]   ;;  %s2914_s14 = inlined_call_operand.vmem [shape: f32[1,32], index: 14, kind: input, shape index: {}, may-alias: {8,14}]   ;;  %s2915_s15 = inlined_call_operand.hbm [shape: f32[32,1], index: 15, kind: input, shape index: {}]   ;;  %s2916_s16 = inlined_call_operand.<no memory space> [shape: f32[1,1], index: 16, kind: input, shape index: {}]   ;;  %s2917_s17 = inlined_call_operand.vmem [shape: f32[2,1], index: 17, kind: output, shape index: {}]  }
   0x1   :  { %2919 = sst [smem:[#allocation15_spill]] %s2900_s0  ;;  %v22_v0 = vstv %s2916_s16 }
   0x2   :  { %2920 = sst [smem:[#allocation16_spill]] %s2901_s1  ;;  %23 = vst [vmem:[#allocation3] sm:$0x1] %v22_v0 }
   0x3   :  { %24 = vsyncpa [#allocation5], 0 }
   0x4   :  { %25 = vsyncpa [#allocation7], 0 }
   0x5   :  { %26 = vsyncpa [#allocation10], 0  ;;  %s48_s28 = sshll.u32 %s2903_s3, 4  ;;  %s2364_s29 = smov [#allocation6]   ;;  %s49_s28 = int_to_ptr.hbm [resolvable:$true] %s48_s28 }
   0x6   :  { %s50_s0 = sshll.u32 %s2364_s29, 4  ;;  %s82_s19 = sshll.u32 %s2909_s9, 4  ;;  %s51_s0 = int_to_ptr.vmem [resolvable:$true] %s50_s0  ;;  %s83_s19 = int_to_ptr.hbm [resolvable:$true] %s82_s19 }
   0x7   :  { %s2365_s1 = smov 128   ;;  %s2366_s20 = smov 8  }
   0x8   :  { %56 = dma.hbm_to_vmem [thread:$0]  %s49_s28, 512, %s51_s0, [#allocation7], %s2365_s1, %s2365_s1, %s2366_s20  }
   0x9   :  { %s2367_s16 = smov [#allocation9]   ;;  %s2921_s24 = sld [smem:[#allocation16_spill]] }
   0xa   :  { %s84_s21 = sshll.u32 %s2367_s16, 4  ;;  %s63_s27 = sshll.u32 %s2905_s5, 4  ;;  %s85_s21 = int_to_ptr.vmem [resolvable:$true] %s84_s21  ;;  %s64_s27 = int_to_ptr.hbm [resolvable:$true] %s63_s27 }
   0xb   :  { %90 = dma.hbm_to_vmem [thread:$0]  %s83_s19, 512, %s85_s21, [#allocation10], %s2365_s1, %s2365_s1, %s2366_s20  }
   0xc   :  { %s2368_s29 = smov [#allocation4]   ;;  %s2369_s9 = smov [#allocation8]  }
   0xd   :  { %s35_s30 = sshll.u32 %s2368_s29, 4  ;;  %s65_s28 = sshll.u32 %s2369_s9, 4  ;;  %s36_s30 = int_to_ptr.vmem [resolvable:$true] %s35_s30  ;;  %s66_s28 = int_to_ptr.vmem [resolvable:$true] %s65_s28 }
   0xe   :  { %s105_s16 = sshll.u32 %s2915_s15, 4  ;;  %s2370_s22 = smov [#allocation11]   ;;  %s106_s16 = int_to_ptr.hbm [resolvable:$true] %s105_s16 }
   0xf   :  { %s33_s25 = sshll.u32 %s2921_s24, 4  ;;  %s107_s19 = sshll.u32 %s2370_s22, 4  ;;  %s34_s25 = int_to_ptr.hbm [resolvable:$true] %s33_s25  ;;  %s108_s19 = int_to_ptr.vmem [resolvable:$true] %s107_s19 }
  0x10   :  { %41 = dma.hbm_to_vmem [thread:$0]  %s34_s25, 1664, %s36_s30, [#allocation5], %s2365_s1, %s2365_s1, %s2366_s20  }
  0x11   :  { %71 = dma.hbm_to_vmem [thread:$0]  %s64_s27, 512, %s66_s28, [#allocation7], %s2365_s1, %s2365_s1, %s2366_s20  }
  0x12   :  { %113 = dma.hbm_to_vmem [thread:$0]  %s106_s16, 512, %s108_s19, [#allocation10], %s2365_s1, %s2365_s1, %s2366_s20  }
  0x13   :  { %2358 = dma.done.wait [#allocation5], 1664  }
  0x14   :  { %2359 = vsyncadd [#allocation5], 4294965632 }
  0x15   :  { %2360 = dma.done.wait [#allocation7], 1024  }
  0x16   :  { %2361 = vsyncadd [#allocation7], 4294966272 }
  0x17   :  { %2362 = dma.done.wait [#allocation10], 1024  }
  0x18   :  { %2363 = vsyncadd [#allocation10], 4294966272  ;;  %v2371_v1 = vmov 0   ;;  %vm172_vm0 = vcmask 1043456   ;;  %s2922_s23 = sld [smem:[#allocation15_spill]]  ;;  %v163_v4 = vld [vmem:[#allocation4 + $0x58] sm:$0xff]  ;;  %v138_v18 = vlaneseq }
  0x19   :  { %2148 = vset.pattern.permute.xlu0 %v2371_v1  ;;  %v164_v3 = vld [vmem:[#allocation4 + $0x60] sm:$0xf]  ;;  %v162_v5 = vld [vmem:[#allocation4 + $0x50] sm:$0xff]  ;;  %v161_v7 = vld [vmem:[#allocation4 + $0x48] sm:$0xff]  ;;  %vm165_vm1 = vcmask 818176   ;;  %v2372_v21 = vmov 0.0  }
  0x1a   :  { %2013 = vmatpush.msk.msra.mxu0 %vm172_vm0, %v164_v3  ;;  %2101 = vmatpush.msk.msra.mxu2 %vm172_vm0, %v164_v3  ;;  %v160_v8 = vld [vmem:[#allocation4 + $0x40] sm:$0xff]  ;;  %v159_v9 = vld [vmem:[#allocation4 + $0x38] sm:$0xff]  ;;  %v158_v10 = vld [vmem:[#allocation4 + $0x30] sm:$0xff]  ;;  %v139_v19 = vand.u32 127, %v138_v18  ;;  %vm213_vm4 = vcmask 261120   ;;  %vm243_vm5 = vcmask 785408  }
  0x1b   :  { %v157_v11 = vld [vmem:[#allocation4 + $0x28] sm:$0xff]  ;;  %v156_v12 = vld [vmem:[#allocation4 + $0x20] sm:$0xff]  ;;  %v155_v13 = vld [vmem:[#allocation4 + $0x18] sm:$0xff]  ;;  %s2373_s29 = smov 92   ;;  %s2375_s30 = smov 124   ;;  %vm250_vm6 = vcmask 31744  }
  0x1c   :  { %180 = vmatpush.msra.mxu0 %v163_v4  ;;  %2102 = vmatpush.msra.mxu2 %v163_v4  ;;  %v154_v14 = vld [vmem:[#allocation4 + $0x10] sm:$0xff]  ;;  %v153_v15 = vld [vmem:[#allocation4 + $0x8] sm:$0xff]  ;;  %v152_v16 = vld [vmem:[#allocation4] sm:$0xff]  ;;  %s2377_s9 = smov 84   ;;  %s2378_s28 = smov 80   ;;  %vm276_vm7 = vcmask 64512  }
  0x1d   :  { %v208_v17 = vld [vmem:[#allocation6 + $0x18] sm:$0xff]  ;;  %v207_v25 = vld [vmem:[#allocation6 + $0x10] sm:$0xff]  ;;  %v206_v26 = vld [vmem:[#allocation6 + $0x8] sm:$0xff]  ;;  %s2379_s0 = smov 64   ;;  %s2380_s18 = smov 120  }
  0x1e   :  { %v136_v2 = vld [vmem:[%s2922_s23] sm:$0xff]  ;;  %v137_v6 = vld [vmem:[%s2922_s23 + $0x8] sm:$0xff]  ;;  %181 = vmatpush.msra.mxu0 %v162_v5  ;;  %2103 = vmatpush.msra.mxu2 %v162_v5  ;;  %s2381_s16 = smov 116   ;;  %s2382_s22 = smov 112  }
  0x1f   :  { %141 = vperm.xlu0 %2148, %v136_v2   ;;  %232 = vmatpush.msra.mxu1 %v208_v17  ;;  %v205_v27 = vld [vmem:[#allocation6] sm:$0xff]  ;;  %v202_v33 = vld [vmem:[%s2902_s2 + $0x8] sm:$0xff]  ;;  %s2383_s19 = smov 60   ;;  %s2384_s5 = smov 52  }
  0x20   :  { %182 = vmatpush.msra.mxu0 %v161_v7  ;;  %2104 = vmatpush.msra.mxu2 %v161_v7  ;;  %v201_v29 = vld [vmem:[%s2902_s2] sm:$0xff]  ;;  %s2374_s2 = smov 96   ;;  %s2385_s21 = smov 108  }
  0x21   :  { %233 = vmatpush.msra.mxu1 %v207_v25  ;;  %v2149_v36 = vld [vmem:[%s2904_s4] ss:$0 sm:$0xff]  ;;  %s2376_s4 = smov 88   ;;  %s2386_s23 = smov 40  }
  0x22   :  { %183 = vmatpush.msra.mxu0 %v160_v8  ;;  %2105 = vmatpush.msra.mxu2 %v160_v8  ;;  %s2387_s15 = smov 48   ;;  %s2388_s1 = smov 56  }
  0x23   :  { %234 = vmatpush.msra.mxu1 %v206_v26  ;;  %s2389_s20 = smov 76   ;;  %s2390_s24 = smov 72  }
  0x24   :  { %184 = vmatpush.msra.mxu0 %v159_v9  ;;  %2106 = vmatpush.msra.mxu2 %v159_v9  ;;  %s2391_s25 = smov 104   ;;  %s2392_s3 = smov 68  }
  0x25   :  { %235 = vmatpush.msra.mxu1 %v205_v27  ;;  %s2393_s26 = smov 44   ;;  %s2394_s27 = smov 100  }
  0x26   :  { %185 = vmatpush.msra.mxu0 %v158_v10  ;;  %2107 = vmatpush.msra.mxu2 %v158_v10 }
  0x27   :  { %144 = vperm.xlu0 %2148, %v137_v6  }
  0x28   :  { %186 = vmatpush.msra.mxu0 %v157_v11  ;;  %2108 = vmatpush.msra.mxu2 %v157_v11 }
  0x2a   :  { %187 = vmatpush.msra.mxu0 %v156_v12  ;;  %2109 = vmatpush.msra.mxu2 %v156_v12 }
  0x2c   :  { %188 = vmatpush.msra.mxu0 %v155_v13  ;;  %2110 = vmatpush.msra.mxu2 %v155_v13 }
  0x2e   :  { %189 = vmatpush.msra.mxu0 %v154_v14  ;;  %2111 = vmatpush.msra.mxu2 %v154_v14 }
  0x30   :  { %190 = vmatpush.msra.mxu0 %v153_v15  ;;  %2112 = vmatpush.msra.mxu2 %v153_v15 }
  0x32   :  { %191 = vmatpush.msra.mxu0 %v152_v16  ;;  %2113 = vmatpush.msra.mxu2 %v152_v16 }
  0x91   :  { %v142_v20 = vpop.permute.xlu0 %141 }
  0x92   :  { %vm146_vm2 = vcmp.eq.s32.totalorder %v139_v19, %v142_v20 }
  0x93   :  { %v2011_v22 = vsel %vm146_vm2, 1.0, %v2372_v21 }
  0x94   :  { %2014 = vmatmul.msk.f32.vlgmr.msra.gmra.mxu0 %vm165_vm1, %v2011_v22 }
  0x99   :  { %v145_v23 = vpop.permute.xlu0 %144 }
  0x9a   :  { %vm147_vm3 = vcmp.eq.s32.totalorder %v139_v19, %v145_v23 }
  0x9b   :  { %v2012_v24 = vsel %vm147_vm3, 1.0, %v2372_v21 }
  0x9c   :  { %2015 = vmatmul.msk.f32.vlgmr.msra.gmra.mxu2 %vm165_vm1, %v2012_v24 }
 0x111   :  { %v193_v28 = vpop.f32.mrf.mxu0 }
 0x112   :  { %v199_v30 = vmul.f32 5.656854, %v193_v28 }
 0x114   :  { %v2517_v31 = vadd.f32 %v201_v29, %v199_v30 }
 0x116   :  { %2016 = vmatmul.msk.f32.vlgmr.msra.gmra.mxu1 %vm213_vm4, %v2517_v31 }
 0x11f   :  { %v196_v32 = vpop.f32.mrf.mxu2 }
 0x120   :  { %v200_v34 = vmul.f32 5.656854, %v196_v32 }
 0x122   :  { %v2524_v35 = vadd.f32 %v202_v33, %v200_v34  ;;  %v2595_v34 = vld [vmem:[#allocation8] sm:$0xf] }
 0x124   :  { %2017 = vmatmul.msk.f32.gmra.mxu1 %vm213_vm4, %v2524_v35 }
 0x193   :  { %v237_v37 = vpop.f32.mrf.mxu1 }
 0x194   :  { %v238_v38 = vadd.f32 %v2149_v36, %v237_v37  ;;  %v2599_v37 = vld [vmem:[#allocation8 + $0x4] sm:$0xf] }
 0x196   :  { %244 = vst.msk [vmem:[#allocation2] sm:$0xff] %vm243_vm5, %v238_v38 }
 0x19d   :  { %v2531_v39 = vld [vmem:[#allocation2] sm:$0xff] }
 0x19e   :  { %317 = vrot.lane.b32.xlu0 %v2531_v39, %s2373_s29  ;;  %248 = vrot.lane.b32.xlu1 %v2531_v39, %s2374_s2 }
 0x1a1   :  { %v240_v40 = vpop.f32.mrf.mxu1 }
 0x1a2   :  { %v241_v41 = vadd.f32 %v2149_v36, %v240_v40 }
 0x1a4   :  { %245 = vst.msk [vmem:[#allocation2 + $0x8] sm:$0xff] %vm243_vm5, %v241_v41 }
 0x1a6   :  { %315 = vrot.lane.b32.xlu0 %v2531_v39, %s2375_s30 }
 0x1ae   :  { %436 = vrot.lane.b32.xlu0 %v2531_v39, %s2376_s4 }
 0x1b6   :  { %530 = vrot.lane.b32.xlu0 %v2531_v39, %s2377_s9 }
 0x1be   :  { %624 = vrot.lane.b32.xlu0 %v2531_v39, %s2378_s28 }
 0x210   :  { %v249_v42 = vpop.permute.xlu1 %248  ;;  %v318_v43 = vpop.permute.xlu0 %317 }
 0x211   :  { %2018 = vmatpush.xpose.msk.msrb.mxu1 %vm250_vm6, %v249_v42 }
 0x214   :  { %2019 = vmatmul.msk.f32.vlgmr.msrb.gmra.mxu1 %vm250_vm6, %v2531_v39 }
 0x218   :  { %v316_v44 = vpop.permute.xlu0 %315 }
 0x220   :  { %v437_v45 = vpop.permute.xlu0 %436 }
 0x221   :  { %2028 = vmatpush.xpose.msk.msra.mxu1 %vm250_vm6, %v437_v45 }
 0x228   :  { %v531_v46 = vpop.permute.xlu0 %530 }
 0x229   :  { %2033 = vmatpush.xpose.msk.msrb.mxu1 %vm250_vm6, %v531_v46 }
 0x230   :  { %v625_v60 = vpop.permute.xlu0 %624 }
 0x291   :  { %v272_v47 = vpop.f32.mrf.mxu1 }
 0x292   :  { %v275_v48 = vmul.f32 0.5, %v272_v47 }
 0x294   :  { %v277_v49 = vsel %vm276_vm7, %v275_v48, -inf }
 0x295   :  { %278 = vmax.xlane.f32.xlu1 %v277_v49 }
 0x308   :  { %v279_v50 = vpop.xlane.xlu1 %278 }
 0x309   :  { %v280_v51 = vsub.f32 %v275_v48, %v279_v50 }
 0x30b   :  { %v281_v52 = vmul.f32 1.442695, %v280_v51 }
 0x30d   :  { %2158 = vpow2.f32 %v281_v52  ;;  %v2608_v52 = vld [vmem:[#allocation8 + $0x10] sm:$0xf] }
 0x313   :  { %v2159_v53 = vpop.eup %2158 }
 0x314   :  { %v283_v54 = vsel %vm276_vm7, %v2159_v53, 0.0 }
 0x315   :  { %284 = vadd.xlane.f32.xlu2 %v283_v54 }
 0x32d   :  { %288 = vrot.lane.b32.xlu2 %v2531_v39, %s2379_s0 }
 0x335   :  { %434 = vrot.lane.b32.xlu2 %v2531_v39, %s2380_s18 }
 0x33d   :  { %528 = vrot.lane.b32.xlu2 %v2531_v39, %s2381_s16 }
 0x345   :  { %622 = vrot.lane.b32.xlu2 %v2531_v39, %s2382_s22 }
 0x34d   :  { %355 = vrot.lane.b32.xlu2 %v2531_v39, %s2383_s19 }
 0x388   :  { %v285_v55 = vpop.xlane.xlu2 %284 }
 0x389   :  { %2160 = vrcp.f32 %v285_v55 }
 0x38f   :  { %v2161_v56 = vpop.eup %2160 }
 0x390   :  { %v289_v57 = vpop.permute.xlu2 %288  ;;  %v287_v58 = vmul.f32 %v2161_v56, %v2159_v53  ;;  %v2615_v56 = vld [vmem:[#allocation8 + $0x8] sm:$0xf] }
 0x391   :  { %309 = vmatpush.msra.mxu3 %v289_v57  ;;  %v2619_v57 = vld [vmem:[#allocation8 + $0xc] sm:$0xf] }
 0x392   :  { %2020 = vmatmul.msk.f32.vlgmr.msra.gmra.mxu3 %vm276_vm7, %v287_v58 }
 0x393   :  { %2021 = vmatpush.xpose.msk.msrb.mxu3 %vm250_vm6, %v318_v43 }
 0x397   :  { %2024 = vmatpush.msk.msra.mxu3 %vm172_vm0, %v2599_v37 }
 0x398   :  { %v435_v59 = vpop.permute.xlu2 %434 }
 0x399   :  { %2029 = vmatmul.msk.f32.vlgmr.msra.gmra.mxu1 %vm250_vm6, %v435_v59 }
 0x39a   :  { %2038 = vmatpush.xpose.msk.msra.mxu1 %vm250_vm6, %v625_v60  ;;  %2022 = vmatmul.msk.f32.vlgmr.msrb.gmra.mxu3 %vm250_vm6, %v316_v44 }
 0x3a0   :  { %v529_v61 = vpop.permute.xlu2 %528 }
 0x3a1   :  { %2034 = vmatmul.msk.f32.vlgmr.msrb.gmra.mxu1 %vm250_vm6, %v529_v61 }
 0x3a8   :  { %v623_v62 = vpop.permute.xlu2 %622 }
 0x3a9   :  { %2039 = vmatmul.msk.f32.vlgmr.msra.gmra.mxu1 %vm250_vm6, %v623_v62 }
 0x3b0   :  { %v356_v63 = vpop.permute.xlu2 %355 }
 0x3b1   :  { %376 = vmatpush.msrb.mxu2 %v356_v63 }
 0x3b3   :  { %2026 = vmatpush.msk.msra.mxu2 %vm172_vm0, %v2595_v34 }
 0x415   :  { %v2569_v0 = vpop.f32.mrf.mxu3 }
 0x416   :  { %v459_v1 = vpop.f32.mrf.mxu1 }
 0x417   :  { %v462_v8 = vmul.f32 0.5, %v459_v1 }
 0x419   :  { %v463_v9 = vsel %vm276_vm7, %v462_v8, -inf }
 0x41d   :  { %v340_v2 = vpop.f32.mrf.mxu3 }
 0x41e   :  { %v343_v3 = vmul.f32 0.5, %v340_v2  ;;  %v553_v4 = vpop.f32.mrf.mxu1 }
 0x41f   :  { %v556_v5 = vmul.f32 0.5, %v553_v4 }
 0x420   :  { %v344_v6 = vsel %vm276_vm7, %v343_v3, -inf }
 0x421   :  { %345 = vmax.xlane.f32.xlu1 %v344_v6  ;;  %v557_v7 = vsel %vm276_vm7, %v556_v5, -inf }
 0x422   :  { %558 = vmax.xlane.f32.xlu2 %v557_v7 }
 0x426   :  { %v647_v10 = vpop.f32.mrf.mxu1 }
 0x427   :  { %v650_v11 = vmul.f32 0.5, %v647_v10 }
 0x429   :  { %464 = vmax.xlane.f32.xlu1 %v463_v9  ;;  %v651_v12 = vsel %vm276_vm7, %v650_v11, -inf }
 0x431   :  { %652 = vmax.xlane.f32.xlu1 %v651_v12 }
 0x43a   :  { %568 = vrot.lane.b32.xlu2 %v2531_v39, %s2384_s5 }
 0x442   :  { %716 = vrot.lane.b32.xlu2 %v2531_v39, %s2385_s21 }
 0x44a   :  { %850 = vrot.lane.b32.xlu2 %v2531_v39, %s2386_s23 }
 0x494   :  { %v346_v13 = vpop.xlane.xlu1 %345 }
 0x495   :  { %v347_v14 = vsub.f32 %v343_v3, %v346_v13  ;;  %v559_v16 = vpop.xlane.xlu2 %558 }
 0x496   :  { %v560_v20 = vsub.f32 %v556_v5, %v559_v16  ;;  %v2635_v16 = vld [vmem:[#allocation2 + $0x8] sm:$0xff] }
 0x497   :  { %v348_v15 = vmul.f32 1.442695, %v347_v14 }
 0x498   :  { %v561_v23 = vmul.f32 1.442695, %v560_v20 }
 0x499   :  { %2162 = vpow2.f32 %v348_v15 }
 0x49c   :  { %v465_v17 = vpop.xlane.xlu1 %464 }
 0x49d   :  { %v466_v18 = vsub.f32 %v462_v8, %v465_v17  ;;  %v569_v45 = vpop.permute.xlu2 %568  ;;  %v2639_v17 = vld [vmem:[#allocation8 + $0x14] sm:$0xf] }
 0x49e   :  { %2046 = vmatpush.msk.msrb.mxu0 %vm172_vm0, %v2639_v17 }
 0x49f   :  { %v2163_v19 = vpop.eup %2162  ;;  %v467_v21 = vmul.f32 1.442695, %v466_v18 }
 0x4a0   :  { %v350_v22 = vsel %vm276_vm7, %v2163_v19, 0.0 }
 0x4a1   :  { %2164 = vpow2.f32 %v467_v21  ;;  %351 = vadd.xlane.f32.xlu0 %v350_v22 }
 0x4a2   :  { %2166 = vpow2.f32 %v561_v23 }
 0x4a4   :  { %v653_v24 = vpop.xlane.xlu1 %652 }
 0x4a5   :  { %v654_v25 = vsub.f32 %v650_v11, %v653_v24  ;;  %v717_v59 = vpop.permute.xlu2 %716 }
 0x4a7   :  { %v2165_v26 = vpop.eup %2164  ;;  %v655_v27 = vmul.f32 1.442695, %v654_v25 }
 0x4a8   :  { %v469_v28 = vsel %vm276_vm7, %v2165_v26, 0.0  ;;  %v2167_v29 = vpop.eup %2166 }
 0x4a9   :  { %2168 = vpow2.f32 %v655_v27  ;;  %470 = vadd.xlane.f32.xlu1 %v469_v28  ;;  %v563_v32 = vsel %vm276_vm7, %v2167_v29, 0.0 }
 0x4ad   :  { %v851_v63 = vpop.permute.xlu2 %850 }
 0x4af   :  { %v2169_v30 = vpop.eup %2168 }
 0x4b0   :  { %v657_v33 = vsel %vm276_vm7, %v2169_v30, 0.0 }
 0x4b1   :  { %564 = vadd.xlane.f32.xlu1 %v563_v32  ;;  %658 = vadd.xlane.f32.xlu0 %v657_v33 }
 0x4c5   :  { %662 = vrot.lane.b32.xlu0 %v2531_v39, %s2387_s15 }
 0x4ca   :  { %474 = vrot.lane.b32.xlu1 %v2531_v39, %s2388_s1 }
 0x4cd   :  { %718 = vrot.lane.b32.xlu0 %v2531_v39, %s2389_s20 }
 0x4d2   :  { %812 = vrot.lane.b32.xlu1 %v2531_v39, %s2390_s24 }
 0x4da   :  { %810 = vrot.lane.b32.xlu1 %v2531_v39, %s2391_s25 }
 0x514   :  { %v352_v36 = vpop.xlane.xlu0 %351 }
 0x515   :  { %2170 = vrcp.f32 %v352_v36 }
 0x51b   :  { %v2171_v38 = vpop.eup %2170 }
 0x51c   :  { %v354_v40 = vmul.f32 %v2171_v38, %v2163_v19  ;;  %v471_v41 = vpop.xlane.xlu1 %470 }
 0x51d   :  { %2172 = vrcp.f32 %v471_v41  ;;  %v2653_v41 = vld [vmem:[#allocation8 + $0x18] sm:$0xf] }
 0x51e   :  { %2023 = vmatmul.msk.f32.vlgmr.msrb.gmra.mxu2 %vm276_vm7, %v354_v40 }
 0x51f   :  { %2031 = vmatpush.msk.msrb.mxu2 %vm172_vm0, %v2615_v56 }
 0x523   :  { %v2173_v47 = vpop.eup %2172 }
 0x524   :  { %v565_v42 = vpop.xlane.xlu1 %564  ;;  %v659_v46 = vpop.xlane.xlu0 %658  ;;  %v473_v48 = vmul.f32 %v2173_v47, %v2165_v26 }
 0x525   :  { %2174 = vrcp.f32 %v565_v42 }
 0x526   :  { %2027 = vmatmul.msk.f32.vlgmr.msra.gmra.mxu2 %vm250_vm6, %v2569_v0  ;;  %2176 = vrcp.f32 %v659_v46 }
 0x527   :  { %2036 = vmatpush.msk.msra.mxu2 %vm172_vm0, %v2619_v57 }
 0x52b   :  { %v2175_v50 = vpop.eup %2174 }
 0x52c   :  { %v567_v51 = vmul.f32 %v2175_v50, %v2167_v29  ;;  %v2177_v53 = vpop.eup %2176 }
 0x52d   :  { %v661_v54 = vmul.f32 %v2177_v53, %v2169_v30 }
 0x537   :  { %v663_v49 = vpop.permute.xlu0 %662 }
 0x53c   :  { %v475_v43 = vpop.permute.xlu1 %474 }
 0x53d   :  { %495 = vmatpush.msrb.mxu3 %v475_v43 }
 0x53f   :  { %v719_v61 = vpop.permute.xlu0 %718 }
 0x544   :  { %v813_v55 = vpop.permute.xlu1 %812 }
 0x54c   :  { %v811_v1 = vpop.permute.xlu1 %810 }
 0x5a1   :  { %v378_v44 = vpop.f32.mrf.mxu2 }
 0x5a2   :  { %2025 = vmatmul.msk.f32.vlgmr.msra.gmra.mxu3 %vm250_vm6, %v378_v44 }
 0x5a3   :  { %589 = vmatpush.msra.mxu3 %v569_v45 }
 0x5a9   :  { %v431_v2 = vpop.f32.mrf.mxu2 }
 0x5aa   :  { %2030 = vmatmul.msk.f32.vlgmr.msrb.gmra.mxu3 %vm276_vm7, %v473_v48 }
 0x5ab   :  { %683 = vmatpush.msrb.mxu3 %v663_v49 }
 0x5b2   :  { %2035 = vmatmul.msk.f32.vlgmr.msra.gmra.mxu3 %vm276_vm7, %v567_v51 }
 0x5b3   :  { %2041 = vmatpush.msk.msra.mxu3 %vm172_vm0, %v2608_v52 }
 0x5ba   :  { %2040 = vmatmul.msk.f32.vlgmr.msrb.gmra.mxu3 %vm276_vm7, %v661_v54 }
 0x5bb   :  { %2048 = vmatpush.xpose.msk.msrb.mxu3 %vm250_vm6, %v813_v55 }
 0x625   :  { %v405_v58 = vpop.f32.mrf.mxu3 }
 0x626   :  { %v432_v3 = vadd.f32 %v431_v2, %v405_v58 }
 0x62d   :  { %v497_v60 = vpop.f32.mrf.mxu3 }
 0x62e   :  { %2032 = vmatmul.msk.f32.vlgmr.msrb.gmra.mxu2 %vm250_vm6, %v497_v60 }
 0x62f   :  { %2043 = vmatpush.xpose.msk.msrb.mxu2 %vm250_vm6, %v719_v61 }
 0x635   :  { %v591_v62 = vpop.f32.mrf.mxu3 }
 0x636   :  { %2037 = vmatmul.msk.f32.vlgmr.msra.gmra.mxu2 %vm250_vm6, %v591_v62 }
 0x637   :  { %871 = vmatpush.msra.mxu2 %v851_v63 }
 0x63d   :  { %v685_v0 = vpop.f32.mrf.mxu3 }
 0x63e   :  { %2042 = vmatmul.msk.f32.vlgmr.msra.gmra.mxu3 %vm250_vm6, %v685_v0  ;;  %2044 = vmatmul.msk.f32.vlgmr.msrb.gmra.mxu2 %vm250_vm6, %v717_v59 }
 0x646   :  { %2049 = vmatmul.msk.f32.vlgmr.msrb.gmra.mxu3 %vm250_vm6, %v811_v1 }
 0x6b1   :  { %v524_v4 = vpop.f32.mrf.mxu2 }
 0x6b2   :  { %v527_v5 = vadd.f32 %v524_v4, %v432_v3 }
 0x6b9   :  { %v618_v6 = vpop.f32.mrf.mxu2 }
 0x6ba   :  { %v621_v7 = vadd.f32 %v618_v6, %v527_v5 }
 0x6c1   :  { %v712_v8 = vpop.f32.mrf.mxu3  ;;  %v741_v9 = vpop.f32.mrf.mxu2 }
 0x6c2   :  { %v2629_v10 = vadd.f32 %v712_v8, %v621_v7  ;;  %v744_v11 = vmul.f32 0.5, %v741_v9 }
 0x6c4   :  { %v745_v12 = vsel %vm276_vm7, %v744_v11, -inf }
 0x6c5   :  { %746 = vmax.xlane.f32.xlu2 %v745_v12 }
 0x6c9   :  { %v835_v13 = vpop.f32.mrf.mxu3 }
 0x6ca   :  { %v838_v14 = vmul.f32 0.5, %v835_v13 }
 0x6cc   :  { %v839_v15 = vsel %vm276_vm7, %v838_v14, -inf }
 0x6cd   :  { %840 = vmax.xlane.f32.xlu1 %v839_v15 }
 0x6dd   :  { %906 = vrot.lane.b32.xlu2 %v2531_v39, %s2392_s3 }
 0x6e5   :  { %1038 = vrot.lane.b32.xlu2 %v2635_v16, %s2379_s0 }
 0x738   :  { %v747_v18 = vpop.xlane.xlu2 %746 }
 0x739   :  { %v748_v19 = vsub.f32 %v744_v11, %v747_v18 }
 0x73b   :  { %v749_v20 = vmul.f32 1.442695, %v748_v19 }
 0x73d   :  { %2178 = vpow2.f32 %v749_v20 }
 0x740   :  { %v841_v21 = vpop.xlane.xlu1 %840  ;;  %v907_v22 = vpop.permute.xlu2 %906 }
 0x741   :  { %v842_v23 = vsub.f32 %v838_v14, %v841_v21  ;;  %2053 = vmatpush.xpose.msk.msra.mxu0 %vm250_vm6, %v907_v22  ;;  %v2698_v14 = vld [vmem:[#allocation8 + $0x1c] sm:$0xf] }
 0x742   :  { %2056 = vmatpush.msk.msrb.mxu2 %vm172_vm0, %v2698_v14 }
 0x743   :  { %v2179_v24 = vpop.eup %2178  ;;  %v843_v25 = vmul.f32 1.442695, %v842_v23 }
 0x744   :  { %v751_v26 = vsel %vm276_vm7, %v2179_v24, 0.0 }
 0x745   :  { %2180 = vpow2.f32 %v843_v25  ;;  %752 = vadd.xlane.f32.xlu1 %v751_v26 }
 0x748   :  { %v1039_v45 = vpop.permute.xlu2 %1038 }
 0x74b   :  { %v2181_v27 = vpop.eup %2180 }
 0x74c   :  { %v845_v28 = vsel %vm276_vm7, %v2181_v27, 0.0 }
 0x74d   :  { %846 = vadd.xlane.f32.xlu0 %v845_v28 }
 0x75e   :  { %1000 = vrot.lane.b32.xlu1 %v2635_v16, %s2374_s2  ;;  %s2395_s2 = smov 36  }
 0x761   :  { %756 = vrot.lane.b32.xlu0 %v2531_v39, %s2393_s26 }
 0x769   :  { %904 = vrot.lane.b32.xlu0 %v2531_v39, %s2394_s27 }
 0x7b8   :  { %v753_v32 = vpop.xlane.xlu1 %752 }
 0x7c0   :  { %v847_v29 = vpop.xlane.xlu0 %846 }
 0x7c1   :  { %2182 = vrcp.f32 %v847_v29 }
 0x7c2   :  { %2184 = vrcp.f32 %v753_v32 }
 0x7c7   :  { %v2183_v30 = vpop.eup %2182 }
 0x7c8   :  { %v849_v33 = vmul.f32 %v2183_v30, %v2181_v27  ;;  %v2185_v36 = vpop.eup %2184 }
 0x7c9   :  { %v755_v38 = vmul.f32 %v2185_v36, %v2179_v24 }
 0x7ca   :  { %2050 = vmatmul.msk.f32.vlgmr.msra.gmra.mxu2 %vm276_vm7, %v849_v33 }
 0x7d0   :  { %v1001_v42 = vpop.permute.xlu1 %1000 }
 0x7d3   :  { %v757_v40 = vpop.permute.xlu0 %756 }
 0x7d4   :  { %777 = vmatpush.msrb.mxu1 %v757_v40 }
 0x7d5   :  { %2045 = vmatmul.msk.f32.vlgmr.msrb.gmra.mxu1 %vm276_vm7, %v755_v38 }
 0x7d6   :  { %2051 = vmatpush.msk.msra.mxu1 %vm172_vm0, %v2653_v41 }
 0x7d8   :  { %2058 = vmatpush.xpose.msk.msrb.mxu1 %vm250_vm6, %v1001_v42 }
 0x7db   :  { %v905_v46 = vpop.permute.xlu0 %904 }
 0x84d   :  { %v873_v43 = vpop.f32.mrf.mxu2 }
 0x84e   :  { %2052 = vmatmul.msk.f32.vlgmr.msra.gmra.mxu1 %vm250_vm6, %v873_v43 }
 0x84f   :  { %2064 = vmatpush.msk.msra.mxu1 %vm172_vm0, %v2599_v37 }
 0x852   :  { %v779_v44 = vpop.f32.mrf.mxu1 }
 0x853   :  { %2047 = vmatmul.msk.f32.vlgmr.msrb.gmra.mxu0 %vm250_vm6, %v779_v44 }
 0x854   :  { %1059 = vmatpush.msrb.mxu0 %v1039_v45 }
 0x856   :  { %2059 = vmatmul.msk.f32.vlgmr.msrb.gmra.mxu1 %vm250_vm6, %v2635_v16 }
 0x857   :  { %2071 = vmatpush.msk.msrb.mxu1 %vm172_vm0, %v2615_v56 }
 0x85b   :  { %2054 = vmatmul.msk.f32.vlgmr.msra.gmra.mxu0 %vm250_vm6, %v905_v46 }
 0x85c   :  { %2066 = vmatpush.msk.msra.mxu0 %vm172_vm0, %v2595_v34 }
 0x8cb   :  { %v900_v47 = vpop.f32.mrf.mxu1 }
 0x8d0   :  { %v806_v48 = vpop.f32.mrf.mxu0 }
 0x8d1   :  { %v809_v37 = vadd.f32 %v806_v48, %v2629_v10 }
 0x8d3   :  { %v1023_v49 = vpop.f32.mrf.mxu1  ;;  %v2671_v50 = vadd.f32 %v900_v47, %v809_v37 }
 0x8d4   :  { %v1026_v51 = vmul.f32 0.5, %v1023_v49 }
 0x8d6   :  { %v1027_v53 = vsel %vm276_vm7, %v1026_v51, -inf }
 0x8d7   :  { %1028 = vmax.xlane.f32.xlu0 %v1027_v53 }
 0x8d8   :  { %v929_v54 = vpop.f32.mrf.mxu0 }
 0x8d9   :  { %v932_v55 = vmul.f32 0.5, %v929_v54 }
 0x8db   :  { %v933_v56 = vsel %vm276_vm7, %v932_v55, -inf }
 0x8dc   :  { %934 = vmax.xlane.f32.xlu2 %v933_v56 }
 0x8f4   :  { %1064 = vrot.lane.b32.xlu2 %v2635_v16, %s2375_s30 }
 0x94a   :  { %v1029_v34 = vpop.xlane.xlu0 %1028 }
 0x94b   :  { %v1030_v58 = vsub.f32 %v1026_v51, %v1029_v34 }
 0x94d   :  { %v1031_v59 = vmul.f32 1.442695, %v1030_v58 }
 0x94f   :  { %2186 = vpow2.f32 %v1031_v59  ;;  %v935_v60 = vpop.xlane.xlu2 %934 }
 0x950   :  { %v936_v61 = vsub.f32 %v932_v55, %v935_v60 }
 0x952   :  { %v937_v62 = vmul.f32 1.442695, %v936_v61 }
 0x954   :  { %2188 = vpow2.f32 %v937_v62 }
 0x955   :  { %v2187_v63 = vpop.eup %2186 }
 0x956   :  { %v1033_v0 = vsel %vm276_vm7, %v2187_v63, 0.0 }
 0x957   :  { %1034 = vadd.xlane.f32.xlu1 %v1033_v0  ;;  %v1065_v12 = vpop.permute.xlu2 %1064 }
 0x95a   :  { %v2189_v1 = vpop.eup %2188 }
 0x95b   :  { %v939_v2 = vsel %vm276_vm7, %v2189_v1, 0.0 }
 0x95c   :  { %940 = vadd.xlane.f32.xlu0 %v939_v2 }
 0x970   :  { %1066 = vrot.lane.b32.xlu0 %v2635_v16, %s2373_s29  ;;  %944 = vrot.lane.b32.xlu1 %v2531_v39, %s2395_s2 }
 0x978   :  { %1268 = vrot.lane.b32.xlu0 %v2635_v16, %s2377_s9  ;;  %1178 = vrot.lane.b32.xlu1 %v2635_v16, %s2376_s4 }
 0x980   :  { %1266 = vrot.lane.b32.xlu0 %v2635_v16, %s2381_s16  ;;  %1176 = vrot.lane.b32.xlu1 %v2635_v16, %s2380_s18 }
 0x9ca   :  { %v1035_v3 = vpop.xlane.xlu1 %1034 }
 0x9cb   :  { %2190 = vrcp.f32 %v1035_v3 }
 0x9cf   :  { %v941_v6 = vpop.xlane.xlu0 %940 }
 0x9d0   :  { %2192 = vrcp.f32 %v941_v6 }
 0x9d1   :  { %v2191_v4 = vpop.eup %2190 }
 0x9d2   :  { %v1037_v5 = vmul.f32 %v2191_v4, %v2187_v63 }
 0x9d4   :  { %2060 = vmatmul.msk.f32.vlgmr.msrb.gmra.mxu0 %vm276_vm7, %v1037_v5 }
 0x9d6   :  { %v2193_v39 = vpop.eup %2192 }
 0x9d7   :  { %v943_v7 = vmul.f32 %v2193_v39, %v2189_v1 }
 0x9e2   :  { %v945_v8 = vpop.permute.xlu1 %944  ;;  %v1067_v9 = vpop.permute.xlu0 %1066 }
 0x9e3   :  { %965 = vmatpush.msra.mxu3 %v945_v8 }
 0x9e4   :  { %2055 = vmatmul.msk.f32.vlgmr.msra.gmra.mxu3 %vm276_vm7, %v943_v7 }
 0x9e5   :  { %2061 = vmatpush.xpose.msk.msrb.mxu3 %vm250_vm6, %v1067_v9 }
 0x9ea   :  { %v1179_v10 = vpop.permute.xlu1 %1178  ;;  %v1269_v11 = vpop.permute.xlu0 %1268 }
 0x9eb   :  { %2068 = vmatpush.xpose.msk.msra.mxu3 %vm250_vm6, %v1179_v10  ;;  %2073 = vmatpush.xpose.msk.msrb.mxu0 %vm250_vm6, %v1269_v11 }
 0x9ec   :  { %2062 = vmatmul.msk.f32.vlgmr.msrb.gmra.mxu3 %vm250_vm6, %v1065_v12 }
 0x9f2   :  { %v1177_v13 = vpop.permute.xlu1 %1176  ;;  %v1267_v18 = vpop.permute.xlu0 %1266 }
 0x9f4   :  { %2069 = vmatmul.msk.f32.vlgmr.msra.gmra.mxu3 %vm250_vm6, %v1177_v13 }
 0xa51   :  { %v1061_v15 = vpop.f32.mrf.mxu0 }
 0xa52   :  { %2067 = vmatmul.msk.f32.vlgmr.msra.gmra.mxu0 %vm250_vm6, %v1061_v15 }
 0xa5a   :  { %2074 = vmatmul.msk.f32.vlgmr.msrb.gmra.mxu0 %vm250_vm6, %v1267_v18 }
 0xa67   :  { %v967_v19 = vpop.f32.mrf.mxu3 }
 0xa68   :  { %2057 = vmatmul.msk.f32.vlgmr.msrb.gmra.mxu2 %vm250_vm6, %v967_v19 }
 0xa6f   :  { %v1089_v20 = vpop.f32.mrf.mxu3 }
 0xa70   :  { %v1092_v21 = vmul.f32 0.5, %v1089_v20 }
 0xa72   :  { %v1093_v22 = vsel %vm276_vm7, %v1092_v21, -inf }
 0xa73   :  { %1094 = vmax.xlane.f32.xlu2 %v1093_v22 }
 0xa77   :  { %v1201_v23 = vpop.f32.mrf.mxu3 }
 0xa78   :  { %v1204_v24 = vmul.f32 0.5, %v1201_v23 }
 0xa7a   :  { %v1205_v25 = vsel %vm276_vm7, %v1204_v24, -inf }
 0xa7b   :  { %1206 = vmax.xlane.f32.xlu0 %v1205_v25 }
 0xacf   :  { %v2707_v26 = vpop.f32.mrf.mxu0 }
 0xad7   :  { %v1291_v27 = vpop.f32.mrf.mxu0 }
 0xad8   :  { %v1294_v28 = vmul.f32 0.5, %v1291_v27 }
 0xada   :  { %v1295_v29 = vsel %vm276_vm7, %v1294_v28, -inf }
 0xadb   :  { %1296 = vmax.xlane.f32.xlu1 %v1295_v29 }
 0xae6   :  { %v1095_v30 = vpop.xlane.xlu2 %1094 }
 0xae7   :  { %v1096_v32 = vsub.f32 %v1092_v21, %v1095_v30 }
 0xae9   :  { %v1097_v33 = vmul.f32 1.442695, %v1096_v32 }
 0xaeb   :  { %2194 = vpow2.f32 %v1097_v33  ;;  %v2735_v1 = vpop.f32.mrf.mxu2 }
 0xaee   :  { %v1207_v36 = vpop.xlane.xlu0 %1206 }
 0xaef   :  { %v1208_v38 = vsub.f32 %v1204_v24, %v1207_v36 }
 0xaf1   :  { %v2195_v40 = vpop.eup %2194  ;;  %v1209_v42 = vmul.f32 1.442695, %v1208_v38 }
 0xaf2   :  { %v1099_v43 = vsel %vm276_vm7, %v2195_v40, 0.0 }
 0xaf3   :  { %2196 = vpow2.f32 %v1209_v42  ;;  %1100 = vadd.xlane.f32.xlu2 %v1099_v43 }
 0xaf9   :  { %v2197_v44 = vpop.eup %2196 }
 0xafa   :  { %v1211_v45 = vsel %vm276_vm7, %v2197_v44, 0.0 }
 0xafb   :  { %1212 = vadd.xlane.f32.xlu0 %v1211_v45 }
 0xb0b   :  { %1104 = vrot.lane.b32.xlu2 %v2635_v16, %s2383_s19 }
 0xb0f   :  { %1216 = vrot.lane.b32.xlu0 %v2635_v16, %s2388_s1 }
 0xb13   :  { %1448 = vrot.lane.b32.xlu2 %v2635_v16, %s2389_s20 }
 0xb17   :  { %1446 = vrot.lane.b32.xlu0 %v2635_v16, %s2385_s21 }
 0xb1b   :  { %1356 = vrot.lane.b32.xlu2 %v2635_v16, %s2382_s22 }
 0xb4e   :  { %v1297_v46 = vpop.xlane.xlu1 %1296 }
 0xb4f   :  { %v1298_v47 = vsub.f32 %v1294_v28, %v1297_v46 }
 0xb51   :  { %v1299_v48 = vmul.f32 1.442695, %v1298_v47 }
 0xb53   :  { %2198 = vpow2.f32 %v1299_v48 }
 0xb59   :  { %v2199_v37 = vpop.eup %2198 }
 0xb5a   :  { %v1301_v49 = vsel %vm276_vm7, %v2199_v37, 0.0 }
 0xb5b   :  { %1302 = vadd.xlane.f32.xlu1 %v1301_v49 }
 0xb66   :  { %v1101_v51 = vpop.xlane.xlu2 %1100 }
 0xb67   :  { %2200 = vrcp.f32 %v1101_v51 }
 0xb6d   :  { %v2201_v53 = vpop.eup %2200 }
 0xb6e   :  { %v1103_v54 = vmul.f32 %v2201_v53, %v2195_v40  ;;  %v1105_v55 = vpop.permute.xlu2 %1104  ;;  %v1213_v56 = vpop.xlane.xlu0 %1212 }
 0xb6f   :  { %1125 = vmatpush.msra.mxu2 %v1105_v55  ;;  %2202 = vrcp.f32 %v1213_v56 }
 0xb70   :  { %2063 = vmatmul.msk.f32.vlgmr.msra.gmra.mxu2 %vm276_vm7, %v1103_v54 }
 0xb74   :  { %1306 = vrot.lane.b32.xlu1 %v2635_v16, %s2384_s5 }
 0xb75   :  { %v2203_v34 = vpop.eup %2202 }
 0xb76   :  { %v1215_v58 = vmul.f32 %v2203_v34, %v2197_v44  ;;  %v1449_v60 = vpop.permute.xlu2 %1448 }
 0xb7c   :  { %1358 = vrot.lane.b32.xlu1 %v2635_v16, %s2378_s28 }
 0xb7e   :  { %v1357_v4 = vpop.permute.xlu2 %1356 }
 0xb81   :  { %v1217_v59 = vpop.permute.xlu0 %1216 }
 0xb82   :  { %1237 = vmatpush.msrb.mxu2 %v1217_v59 }
 0xb83   :  { %2070 = vmatmul.msk.f32.vlgmr.msrb.gmra.mxu2 %vm276_vm7, %v1215_v58 }
 0xb84   :  { %2076 = vmatpush.msk.msra.mxu2 %vm172_vm0, %v2619_v57 }
 0xb86   :  { %2083 = vmatpush.xpose.msk.msrb.mxu2 %vm250_vm6, %v1449_v60 }
 0xb89   :  { %v1447_v6 = vpop.permute.xlu0 %1446 }
 0xbce   :  { %v1303_v61 = vpop.xlane.xlu1 %1302 }
 0xbcf   :  { %2204 = vrcp.f32 %v1303_v61 }
 0xbd5   :  { %v2205_v62 = vpop.eup %2204 }
 0xbd6   :  { %v1305_v63 = vmul.f32 %v2205_v62, %v2199_v37  ;;  %v997_v62 = vadd.f32 %v2735_v1, %v2671_v50 }
 0xbe6   :  { %v1307_v0 = vpop.permute.xlu1 %1306 }
 0xbe7   :  { %1327 = vmatpush.msrb.mxu3 %v1307_v0 }
 0xbe8   :  { %2075 = vmatmul.msk.f32.vlgmr.msrb.gmra.mxu3 %vm276_vm7, %v1305_v63  ;;  %v2783_v63 = vld [vmem:[%s2906_s6] ss:$0 sm:$0xff] }
 0xbe9   :  { %2081 = vmatpush.msk.msra.mxu3 %vm172_vm0, %v2608_v52 }
 0xbee   :  { %v1359_v3 = vpop.permute.xlu1 %1358 }
 0xbf3   :  { %v1127_v2 = vpop.f32.mrf.mxu2 }
 0xbf4   :  { %2065 = vmatmul.msk.f32.vlgmr.msra.gmra.mxu1 %vm250_vm6, %v1127_v2  ;;  %v1720_v2 = vadd.f32 %v2783_v63, %v997_v62  ;;  %v1832_v62 = vld [vmem:[%s2911_s11 + $0x30] sm:$0xff] }
 0xbf5   :  { %2078 = vmatpush.xpose.msk.msra.mxu1 %vm250_vm6, %v1359_v3 }
 0xc06   :  { %v1239_v57 = vpop.f32.mrf.mxu2 }
 0xc07   :  { %2072 = vmatmul.msk.f32.vlgmr.msrb.gmra.mxu1 %vm250_vm6, %v1239_v57  ;;  %v1722_v57 = vadd.f32 %v1720_v2, %v2517_v31  ;;  %v1830_v2 = vld [vmem:[%s2911_s11 + $0x20] sm:$0xff] }
 0xc0f   :  { %2079 = vmatmul.msk.f32.vlgmr.msra.gmra.mxu1 %vm250_vm6, %v1357_v4 }
 0xc6b   :  { %v1329_v5 = vpop.f32.mrf.mxu3 }
 0xc6c   :  { %2077 = vmatmul.msk.f32.vlgmr.msra.gmra.mxu2 %vm250_vm6, %v1329_v5  ;;  %v1726_v5 = vsel %vm213_vm4, %v1722_v57, 0.0 }
 0xc71   :  { %v1150_v52 = vpop.f32.mrf.mxu1 }
 0xc72   :  { %v1174_v39 = vadd.f32 %v2707_v26, %v1150_v52  ;;  %v2396_v52 = vmov 32.0  }
 0xc74   :  { %2084 = vmatmul.msk.f32.vlgmr.msrb.gmra.mxu2 %vm250_vm6, %v1447_v6 }
 0xc84   :  { %v1262_v7 = vpop.f32.mrf.mxu1 }
 0xc85   :  { %v1265_v8 = vadd.f32 %v1262_v7, %v1174_v39 }
 0xc8c   :  { %v1381_v9 = vpop.f32.mrf.mxu1 }
 0xc8d   :  { %v1384_v10 = vmul.f32 0.5, %v1381_v9 }
 0xc8f   :  { %v1385_v11 = vsel %vm276_vm7, %v1384_v10, -inf }
 0xc90   :  { %1386 = vmax.xlane.f32.xlu0 %v1385_v11 }
 0xcef   :  { %v1352_v12 = vpop.f32.mrf.mxu2 }
 0xcf0   :  { %v1355_v13 = vadd.f32 %v1352_v12, %v1265_v8 }
 0xcf7   :  { %v1471_v15 = vpop.f32.mrf.mxu2 }
 0xcf8   :  { %v1474_v18 = vmul.f32 0.5, %v1471_v15 }
 0xcfa   :  { %v1475_v19 = vsel %vm276_vm7, %v1474_v18, -inf }
 0xcfb   :  { %1476 = vmax.xlane.f32.xlu1 %v1475_v19 }
 0xd03   :  { %v1387_v20 = vpop.xlane.xlu0 %1386 }
 0xd04   :  { %v1388_v21 = vsub.f32 %v1384_v10, %v1387_v20 }
 0xd06   :  { %v1389_v22 = vmul.f32 1.442695, %v1388_v21 }
 0xd08   :  { %2206 = vpow2.f32 %v1389_v22 }
 0xd0e   :  { %v2207_v23 = vpop.eup %2206 }
 0xd0f   :  { %v1391_v24 = vsel %vm276_vm7, %v2207_v23, 0.0 }
 0xd10   :  { %1392 = vadd.xlane.f32.xlu2 %v1391_v24 }
 0xd14   :  { %1486 = vrot.lane.b32.xlu1 %v2635_v16, %s2393_s26 }
 0xd1c   :  { %1626 = vrot.lane.b32.xlu1 %v2635_v16, %s2394_s27 }
 0xd28   :  { %1396 = vrot.lane.b32.xlu2 %v2635_v16, %s2387_s15 }
 0xd30   :  { %1628 = vrot.lane.b32.xlu2 %v2635_v16, %s2392_s3 }
 0xd6e   :  { %v1477_v25 = vpop.xlane.xlu1 %1476 }
 0xd6f   :  { %v1478_v26 = vsub.f32 %v1474_v18, %v1477_v25 }
 0xd71   :  { %v1479_v27 = vmul.f32 1.442695, %v1478_v26 }
 0xd73   :  { %2208 = vpow2.f32 %v1479_v27 }
 0xd79   :  { %v2209_v28 = vpop.eup %2208 }
 0xd7a   :  { %v1481_v29 = vsel %vm276_vm7, %v2209_v28, 0.0 }
 0xd7b   :  { %1482 = vadd.xlane.f32.xlu0 %v1481_v29 }
 0xd83   :  { %v1393_v30 = vpop.xlane.xlu2 %1392 }
 0xd84   :  { %2210 = vrcp.f32 %v1393_v30  ;;  %v1790_v30 = vld [vmem:[#allocation9 + $0x18] sm:$0xff] }
 0xd86   :  { %v1487_v32 = vpop.permute.xlu1 %1486 }
 0xd87   :  { %1507 = vmatpush.msrb.mxu1 %v1487_v32  ;;  %v1789_v32 = vld [vmem:[#allocation9 + $0x10] sm:$0xff] }
 0xd89   :  { %2091 = vmatpush.msk.msra.mxu1 %vm172_vm0, %v2653_v41 }
 0xd8a   :  { %v2211_v33 = vpop.eup %2210 }
 0xd8b   :  { %v1395_v36 = vmul.f32 %v2211_v33, %v2207_v23  ;;  %v1397_v38 = vpop.permute.xlu2 %1396  ;;  %v1788_v33 = vld [vmem:[#allocation9 + $0x8] sm:$0xff] }
 0xd8c   :  { %1417 = vmatpush.msra.mxu0 %v1397_v38  ;;  %v1787_v38 = vld [vmem:[#allocation9] sm:$0xff] }
 0xd8d   :  { %2080 = vmatmul.msk.f32.vlgmr.msra.gmra.mxu0 %vm276_vm7, %v1395_v36 }
 0xd8e   :  { %2086 = vmatpush.msk.msrb.mxu0 %vm172_vm0, %v2639_v17  ;;  %v1627_v47 = vpop.permute.xlu1 %1626 }
 0xd8f   :  { %1538 = vrot.lane.b32.xlu0 %v2635_v16, %s2390_s24 }
 0xd93   :  { %v1629_v40 = vpop.permute.xlu2 %1628 }
 0xd94   :  { %2093 = vmatpush.xpose.msk.msra.mxu0 %vm250_vm6, %v1629_v40 }
 0xd97   :  { %1536 = vrot.lane.b32.xlu0 %v2635_v16, %s2391_s25 }
 0xdee   :  { %v1483_v42 = vpop.xlane.xlu0 %1482 }
 0xdef   :  { %2212 = vrcp.f32 %v1483_v42  ;;  %v1841_v42 = vld [vmem:[%s2911_s11 + $0x78] sm:$0xff] }
 0xdf5   :  { %v2213_v41 = vpop.eup %2212 }
 0xdf6   :  { %v1485_v43 = vmul.f32 %v2213_v41, %v2209_v28  ;;  %v1839_v41 = vld [vmem:[%s2911_s11 + $0x68] sm:$0xff] }
 0xdf8   :  { %2085 = vmatmul.msk.f32.vlgmr.msrb.gmra.mxu1 %vm276_vm7, %v1485_v43 }
 0xdf9   :  { %1813 = vmatpush.msrb.mxu1 %v1790_v30 }
 0xdfb   :  { %1814 = vmatpush.msrb.mxu1 %v1789_v32 }
 0xdfd   :  { %1815 = vmatpush.msrb.mxu1 %v1788_v33 }
 0xdff   :  { %1816 = vmatpush.msrb.mxu1 %v1787_v38 }
 0xe01   :  { %v1539_v44 = vpop.permute.xlu0 %1538 }
 0xe02   :  { %2088 = vmatpush.xpose.msk.msrb.mxu3 %vm250_vm6, %v1539_v44  ;;  %v1838_v44 = vld [vmem:[%s2911_s11 + $0x60] sm:$0xff] }
 0xe09   :  { %v1537_v17 = vpop.permute.xlu0 %1536 }
 0xe0a   :  { %v1419_v45 = vpop.f32.mrf.mxu0 }
 0xe0b   :  { %2082 = vmatmul.msk.f32.vlgmr.msra.gmra.mxu3 %vm250_vm6, %v1419_v45 }
 0xe13   :  { %2089 = vmatmul.msk.f32.vlgmr.msrb.gmra.mxu3 %vm250_vm6, %v1537_v17 }
 0xe75   :  { %v1509_v46 = vpop.f32.mrf.mxu1 }
 0xe76   :  { %2087 = vmatmul.msk.f32.vlgmr.msrb.gmra.mxu0 %vm250_vm6, %v1509_v46 }
 0xe77   :  { %1846 = vmatpush.msrb.mxu0 %v1841_v42 }
 0xe7e   :  { %2094 = vmatmul.msk.f32.vlgmr.msra.gmra.mxu0 %vm250_vm6, %v1627_v47 }
 0xe8e   :  { %v1442_v48 = vpop.f32.mrf.mxu3 }
 0xe8f   :  { %v1445_v37 = vadd.f32 %v1442_v48, %v1355_v13 }
 0xe96   :  { %v1561_v49 = vpop.f32.mrf.mxu3 }
 0xe97   :  { %v1564_v51 = vmul.f32 0.5, %v1561_v49 }
 0xe99   :  { %v1565_v53 = vsel %vm276_vm7, %v1564_v51, -inf }
 0xe9a   :  { %1566 = vmax.xlane.f32.xlu0 %v1565_v53 }
 0xeae   :  { %1666 = vrot.lane.b32.xlu0 %v2635_v16, %s2395_s2 }
 0xef3   :  { %v1532_v54 = vpop.f32.mrf.mxu0 }
 0xef4   :  { %v2775_v55 = vadd.f32 %v1532_v54, %v1445_v37  ;;  %v2817_v37 = vld [vmem:[%s2907_s7] ss:$0 sm:$0xff] }
 0xef5   :  { %v2824_v54 = vld [vmem:[%s2908_s8] ss:$0 sm:$0xff] }
 0xefb   :  { %v1651_v56 = vpop.f32.mrf.mxu0 }
 0xefc   :  { %v1654_v34 = vmul.f32 0.5, %v1651_v56 }
 0xefe   :  { %v1655_v58 = vsel %vm276_vm7, %v1654_v34, -inf }
 0xeff   :  { %1656 = vmax.xlane.f32.xlu2 %v1655_v58  ;;  %v1836_v58 = vld [vmem:[%s2911_s11 + $0x50] sm:$0xff] }
 0xf0d   :  { %v1567_v59 = vpop.xlane.xlu0 %1566 }
 0xf0e   :  { %v1568_v60 = vsub.f32 %v1564_v51, %v1567_v59  ;;  %v1835_v59 = vld [vmem:[%s2911_s11 + $0x48] sm:$0xff] }
 0xf10   :  { %v1569_v61 = vmul.f32 1.442695, %v1568_v60  ;;  %v1834_v60 = vld [vmem:[%s2911_s11 + $0x40] sm:$0xff] }
 0xf12   :  { %2214 = vpow2.f32 %v1569_v61  ;;  %v1833_v61 = vld [vmem:[%s2911_s11 + $0x38] sm:$0xff] }
 0xf18   :  { %v2215_v0 = vpop.eup %2214 }
 0xf19   :  { %v1571_v3 = vsel %vm276_vm7, %v2215_v0, 0.0 }
 0xf1a   :  { %1572 = vadd.xlane.f32.xlu2 %v1571_v3  ;;  %v1829_v3 = vld [vmem:[%s2911_s11 + $0x18] sm:$0xff] }
 0xf20   :  { %v1667_v4 = vpop.permute.xlu0 %1666 }
 0xf21   :  { %1687 = vmatpush.msra.mxu3 %v1667_v4  ;;  %v1827_v4 = vld [vmem:[%s2911_s11 + $0x8] sm:$0xff] }
 0xf22   :  { %1727 = vadd.xlane.f32.xlu2 %v1726_v5  ;;  %v1826_v5 = vld [vmem:[%s2911_s11] sm:$0xff] }
 0xf72   :  { %v1657_v6 = vpop.xlane.xlu2 %1656 }
 0xf73   :  { %v1658_v50 = vsub.f32 %v1654_v34, %v1657_v6  ;;  %v1837_v34 = vld [vmem:[%s2911_s11 + $0x58] sm:$0xff] }
 0xf75   :  { %v1659_v1 = vmul.f32 1.442695, %v1658_v50 }
 0xf77   :  { %2216 = vpow2.f32 %v1659_v1 }
 0xf78   :  { %2218 = vrcp.f32 %v2396_v52 }
 0xf7d   :  { %v2217_v39 = vpop.eup %2216 }
 0xf7e   :  { %v1661_v7 = vsel %vm276_vm7, %v2217_v39, 0.0  ;;  %v2219_v8 = vpop.eup %2218 }
 0xf7f   :  { %1662 = vadd.xlane.f32.xlu1 %v1661_v7  ;;  %v1733_v9 = vmul.f32 32.0, %v2219_v8  ;;  %vm1737_vm8 = vweird.f32 %v2219_v8 }
 0xf81   :  { %v1734_v10 = vsub.f32 1.0, %v1733_v9 }
 0xf83   :  { %v1735_v11 = vmul.f32 %v2219_v8, %v1734_v10 }
 0xf85   :  { %v1736_v12 = vadd.f32 %v2219_v8, %v1735_v11 }
 0xf87   :  { %v2790_v13 = vsel %vm1737_vm8, %v2219_v8, %v1736_v12 }
 0xf8d   :  { %v1573_v31 = vpop.xlane.xlu2 %1572 }
 0xf95   :  { %v1728_v15 = vpop.xlane.xlu2 %1727 }
 0xf96   :  { %v1739_v18 = vmul.f32 %v2790_v13, %v1728_v15 }
 0xf98   :  { %v1741_v19 = vsub.f32 %v1722_v57, %v1739_v18  ;;  %1576 = vrot.lane.b32.xlu1 %v2635_v16, %s2386_s23  ;;  %v1828_v57 = vld [vmem:[%s2911_s11 + $0x10] sm:$0xff] }
 0xf9a   :  { %v1743_v20 = vmul.f32 %v1741_v19, %v1741_v19 }
 0xf9c   :  { %v1745_v21 = vsel %vm213_vm4, %v1743_v20, 0.0 }
 0xf9d   :  { %1746 = vadd.xlane.f32.xlu0 %v1745_v21 }
 0xff2   :  { %v1663_v22 = vpop.xlane.xlu1 %1662 }
 0xff3   :  { %2220 = vrcp.f32 %v1663_v22 }
 0xff4   :  { %2222 = vrcp.f32 %v1573_v31 }
 0xff9   :  { %v2221_v23 = vpop.eup %2220 }
 0xffa   :  { %v1665_v24 = vmul.f32 %v2221_v23, %v2217_v39  ;;  %v2223_v25 = vpop.eup %2222  ;;  %v2153_v39 = vld [vmem:[%s2910_s10] ss:$0 sm:$0xff] }
 0xffb   :  { %v1575_v26 = vmul.f32 %v2223_v25, %v2215_v0  ;;  %v1831_v0 = vld [vmem:[%s2911_s11 + $0x28] sm:$0xff] }
 0xffc   :  { %2095 = vmatmul.msk.f32.vlgmr.msra.gmra.mxu3 %vm276_vm7, %v1665_v24 }
0x100a   :  { %v1577_v27 = vpop.permute.xlu1 %1576 }
0x100b   :  { %1597 = vmatpush.msra.mxu2 %v1577_v27 }
0x100c   :  { %2090 = vmatmul.msk.f32.vlgmr.msra.gmra.mxu2 %vm276_vm7, %v1575_v26  ;;  %vm1950_vm7 = vcmask 1040384  }
0x100d   :  { %2096 = vmatpush.msk.msrb.mxu2 %vm172_vm0, %v2698_v14  ;;  %v1840_v14 = vld [vmem:[%s2911_s11 + $0x70] sm:$0xff] }
0x100e   :  { %1847 = vmatpush.msrb.mxu0 %v1840_v14 }
0x1010   :  { %v1747_v16 = vpop.xlane.xlu0 %1746  ;;  %1848 = vmatpush.msrb.mxu0 %v1839_v41 }
0x1011   :  { %v1751_v28 = vmul.f32 %v1747_v16, %v2790_v13 }
0x1012   :  { %1849 = vmatpush.msrb.mxu0 %v1838_v44 }
0x1013   :  { %v1753_v29 = vadd.f32 1e-05, %v1751_v28 }
0x1014   :  { %1850 = vmatpush.msrb.mxu0 %v1837_v34 }
0x1015   :  { %2224 = vrsqrt.f32 %v1753_v29  ;;  %vm1761_vm10 = vweird.f32 %v1753_v29 }
0x1016   :  { %1851 = vmatpush.msrb.mxu0 %v1836_v58 }
0x1018   :  { %1852 = vmatpush.msrb.mxu0 %v1835_v59 }
0x101a   :  { %1853 = vmatpush.msrb.mxu0 %v1834_v60 }
0x101b   :  { %v2225_v36 = vpop.eup %2224 }
0x101c   :  { %v1756_v40 = vmul.f32 %v2225_v36, %v1753_v29  ;;  %vm1762_vm9 = vweird.f32 %v2225_v36  ;;  %1854 = vmatpush.msrb.mxu0 %v1833_v61 }
0x101d   :  { %vm1763_vm11 = vmor %vm1761_vm10, %vm1762_vm9 }
0x101e   :  { %v1757_v43 = vmul.f32 %v2225_v36, %v1756_v40  ;;  %1855 = vmatpush.msrb.mxu0 %v1832_v62 }
0x1020   :  { %v1758_v45 = vmul.f32 0.5, %v1757_v43  ;;  %1856 = vmatpush.msrb.mxu0 %v1831_v0 }
0x1022   :  { %v1759_v46 = vsub.f32 1.5, %v1758_v45  ;;  %1857 = vmatpush.msrb.mxu0 %v1830_v2 }
0x1024   :  { %v1760_v47 = vmul.f32 %v2225_v36, %v1759_v46  ;;  %1858 = vmatpush.msrb.mxu0 %v1829_v3 }
0x1026   :  { %v1764_v48 = vsel %vm1763_vm11, %v2225_v36, %v1760_v47  ;;  %1859 = vmatpush.msrb.mxu0 %v1828_v57  ;;  %v1955_v57 = vld [vmem:[#allocation11 + $0x18] sm:$0xff] }
0x1027   :  { %v1775_v49 = vmul.f32 %v1764_v48, %v1741_v19  ;;  %1975 = vmatpush.msrb.mxu3 %v1955_v57 }
0x1028   :  { %1860 = vmatpush.msrb.mxu0 %v1827_v4  ;;  %v1954_v4 = vld [vmem:[#allocation11 + $0x10] sm:$0xff] }
0x1029   :  { %v1780_v53 = vmul.f32 %v2817_v37, %v1775_v49  ;;  %1976 = vmatpush.msrb.mxu3 %v1954_v4 }
0x102a   :  { %1861 = vmatpush.msrb.mxu0 %v1826_v5 }
0x102b   :  { %v1785_v56 = vadd.f32 %v2824_v54, %v1780_v53 }
0x107f   :  { %v1689_v17 = vpop.f32.mrf.mxu3 }
0x1080   :  { %2097 = vmatmul.msk.f32.vlgmr.msrb.gmra.mxu2 %vm250_vm6, %v1689_v17 }
0x108f   :  { %v1599_v51 = vpop.f32.mrf.mxu2 }
0x1090   :  { %2092 = vmatmul.msk.f32.vlgmr.msra.gmra.mxu1 %vm250_vm6, %v1599_v51 }
0x1098   :  { %2098 = vmatmul.msk.f32.vlgmr.msrb.gmra.mxu1 %vm213_vm4, %v1785_v56 }
0x1103   :  { %v1712_v1 = vpop.f32.mrf.mxu2 }
0x110d   :  { %v1622_v6 = vpop.f32.mrf.mxu1 }
0x110e   :  { %v1625_v50 = vadd.f32 %v1622_v6, %v2775_v55 }
0x1110   :  { %v1715_v52 = vadd.f32 %v1712_v1, %v1625_v50  ;;  %v1953_v50 = vld [vmem:[#allocation11 + $0x8] sm:$0xff] }
0x1111   :  { %1977 = vmatpush.msrb.mxu3 %v1953_v50 }
0x1112   :  { %v1721_v7 = vadd.f32 %v2783_v63, %v1715_v52  ;;  %v2154_v63 = vld [vmem:[%s2912_s12] ss:$0 sm:$0xff] }
0x1113   :  { %v1952_v52 = vld [vmem:[#allocation11] sm:$0xff] }
0x1114   :  { %v1723_v8 = vadd.f32 %v1721_v7, %v2524_v35  ;;  %1978 = vmatpush.msrb.mxu3 %v1952_v52 }
0x1115   :  { %v1818_v9 = vpop.f32.mrf.mxu1 }
0x1116   :  { %v1819_v10 = vadd.f32 %v2153_v39, %v1818_v9  ;;  %v1729_v11 = vsel %vm213_vm4, %v1723_v8, 0.0  ;;  %v2156_v9 = vld [vmem:[%s2914_s14] ss:$0 sm:$0xff] }
0x1117   :  { %1730 = vadd.xlane.f32.xlu2 %v1729_v11 }
0x1118   :  { %v1824_v31 = vmax.f32 %v1819_v10, 0.0 }
0x111a   :  { %1862 = vmatmul.f32.vlgmr.msrb.gmra.mxu0 %v1824_v31 }
0x118a   :  { %v1731_v12 = vpop.xlane.xlu2 %1730 }
0x118b   :  { %v1740_v55 = vmul.f32 %v2790_v13, %v1731_v12 }
0x118d   :  { %v1742_v15 = vsub.f32 %v1723_v8, %v1740_v55  ;;  %v2397_v55 = vmov 8.0  }
0x118f   :  { %v1744_v18 = vmul.f32 %v1742_v15, %v1742_v15 }
0x1191   :  { %v1748_v19 = vsel %vm213_vm4, %v1744_v18, 0.0 }
0x1192   :  { %1749 = vadd.xlane.f32.xlu2 %v1748_v19 }
0x1197   :  { %v1863_v35 = vpop.f32.mrf.mxu0 }
0x1198   :  { %v1864_v20 = vadd.f32 %v2154_v63, %v1863_v35 }
0x119a   :  { %v1869_v21 = vadd.f32 %v1864_v20, %v1785_v56 }
0x119c   :  { %v1873_v22 = vsel %vm213_vm4, %v1869_v21, 0.0 }
0x119d   :  { %1874 = vadd.xlane.f32.xlu1 %v1873_v22 }
0x1205   :  { %v1750_v23 = vpop.xlane.xlu2 %1749 }
0x1206   :  { %v1752_v24 = vmul.f32 %v1750_v23, %v2790_v13 }
0x1208   :  { %v1754_v25 = vadd.f32 1e-05, %v1752_v24 }
0x120a   :  { %2226 = vrsqrt.f32 %v1754_v25  ;;  %vm1771_vm13 = vweird.f32 %v1754_v25 }
0x1210   :  { %v2227_v26 = vpop.eup %2226  ;;  %v1875_v41 = vpop.xlane.xlu1 %1874 }
0x1211   :  { %v1766_v27 = vmul.f32 %v2227_v26, %v1754_v25  ;;  %vm1772_vm12 = vweird.f32 %v2227_v26  ;;  %v1879_v44 = vmul.f32 %v1875_v41, %v2790_v13 }
0x1212   :  { %vm1773_vm14 = vmor %vm1771_vm13, %vm1772_vm12 }
0x1213   :  { %v1767_v16 = vmul.f32 %v2227_v26, %v1766_v27  ;;  %v1881_v46 = vsub.f32 %v1869_v21, %v1879_v44 }
0x1215   :  { %v1768_v28 = vmul.f32 0.5, %v1767_v16  ;;  %v1883_v48 = vmul.f32 %v1881_v46, %v1881_v46 }
0x1217   :  { %v1769_v29 = vsub.f32 1.5, %v1768_v28 }
0x1219   :  { %v1770_v30 = vmul.f32 %v2227_v26, %v1769_v29 }
0x121b   :  { %v1774_v32 = vsel %vm1773_vm14, %v2227_v26, %v1770_v30 }
0x121c   :  { %v1776_v33 = vmul.f32 %v1774_v32, %v1742_v15 }
0x121e   :  { %v1781_v36 = vmul.f32 %v2817_v37, %v1776_v33  ;;  %v1885_v37 = vsel %vm213_vm4, %v1883_v48, 0.0 }
0x1220   :  { %v1786_v38 = vadd.f32 %v2824_v54, %v1781_v36 }
0x1222   :  { %2099 = vmatmul.msk.f32.gmra.mxu1 %vm213_vm4, %v1786_v38 }
0x129f   :  { %v1821_v40 = vpop.f32.mrf.mxu1 }
0x12a0   :  { %v1822_v42 = vadd.f32 %v2153_v39, %v1821_v40  ;;  %v2155_v39 = vld [vmem:[%s2913_s13] ss:$0 sm:$0xff] }
0x12a2   :  { %v1825_v14 = vmax.f32 %v1822_v42, 0.0 }
0x12a4   :  { %1865 = vmatmul.f32.gmra.mxu0 %v1825_v14 }
0x1321   :  { %v1866_v43 = vpop.f32.mrf.mxu0 }
0x1322   :  { %v1867_v45 = vadd.f32 %v2154_v63, %v1866_v43 }
0x1324   :  { %v1870_v17 = vadd.f32 %v1867_v45, %v1786_v38 }
0x1326   :  { %v1876_v47 = vsel %vm213_vm4, %v1870_v17, 0.0 }
0x1327   :  { %1877 = vadd.xlane.f32.xlu2 %v1876_v47  ;;  %v2157_v47 = vld [vmem:[#allocation3] ss:$0 sm:$0xff] }
0x132f   :  { %1886 = vadd.xlane.f32.xlu2 %v1885_v37 }
0x139a   :  { %v1878_v49 = vpop.xlane.xlu2 %1877 }
0x139b   :  { %v1880_v51 = vmul.f32 %v1878_v49, %v2790_v13 }
0x139d   :  { %v1882_v53 = vsub.f32 %v1870_v17, %v1880_v51 }
0x139f   :  { %v1884_v54 = vmul.f32 %v1882_v53, %v1882_v53 }
0x13a1   :  { %v1888_v56 = vsel %vm213_vm4, %v1884_v54, 0.0 }
0x13a2   :  { %1889 = vadd.xlane.f32.xlu2 %v1888_v56  ;;  %v1887_v34 = vpop.xlane.xlu2 %1886 }
0x13a3   :  { %v1891_v58 = vmul.f32 %v1887_v34, %v2790_v13 }
0x13a5   :  { %v1893_v59 = vadd.f32 1e-05, %v1891_v58 }
0x13a7   :  { %2228 = vrsqrt.f32 %v1893_v59  ;;  %vm1901_vm0 = vweird.f32 %v1893_v59 }
0x13ad   :  { %v2229_v60 = vpop.eup %2228 }
0x13ae   :  { %v1896_v61 = vmul.f32 %v2229_v60, %v1893_v59  ;;  %vm1902_vm15 = vweird.f32 %v2229_v60 }
0x13af   :  { %vm1903_vm1 = vmor %vm1901_vm0, %vm1902_vm15 }
0x13b0   :  { %v1897_v62 = vmul.f32 %v2229_v60, %v1896_v61 }
0x13b2   :  { %v1898_v0 = vmul.f32 0.5, %v1897_v62 }
0x13b4   :  { %v1899_v2 = vsub.f32 1.5, %v1898_v0 }
0x13b6   :  { %v1900_v3 = vmul.f32 %v2229_v60, %v1899_v2 }
0x13b8   :  { %v1904_v5 = vsel %vm1903_vm1, %v2229_v60, %v1900_v3 }
0x13b9   :  { %v1915_v7 = vmul.f32 %v1904_v5, %v1881_v46 }
0x13bb   :  { %v1920_v10 = vmul.f32 %v2155_v39, %v1915_v7 }
0x13bd   :  { %v1925_v31 = vadd.f32 %v2156_v9, %v1920_v10 }
0x13bf   :  { %v1927_v15 = vsel %vm213_vm4, %v1925_v31, 0.0 }
0x13c0   :  { %v1928_v19 = vrot.slane %v1927_v15, 4 }
0x13c2   :  { %v1929_v22 = vadd.f32 %v1928_v19, %v1927_v15 }
0x13c4   :  { %v1930_v26 = vrot.slane %v1929_v22, 2 }
0x13c6   :  { %v1931_v30 = vadd.f32 %v1930_v26, %v1929_v22 }
0x13c8   :  { %v1932_v36 = vrot.slane %v1931_v30, 1 }
0x13ca   :  { %v1933_v14 = vadd.f32 %v1932_v36, %v1931_v30 }
0x1415   :  { %v1890_v6 = vpop.xlane.xlu2 %1889 }
0x1416   :  { %v1892_v1 = vmul.f32 %v1890_v6, %v2790_v13 }
0x1418   :  { %v1894_v8 = vadd.f32 1e-05, %v1892_v1 }
0x141a   :  { %2230 = vrsqrt.f32 %v1894_v8  ;;  %vm1911_vm3 = vweird.f32 %v1894_v8 }
0x141b   :  { %2232 = vrcp.f32 %v2397_v55 }
0x1420   :  { %v2231_v11 = vpop.eup %2230 }
0x1421   :  { %v1906_v12 = vmul.f32 %v2231_v11, %v1894_v8  ;;  %vm1912_vm2 = vweird.f32 %v2231_v11  ;;  %v2233_v35 = vpop.eup %2232 }
0x1422   :  { %vm1913_vm5 = vmor %vm1911_vm3, %vm1912_vm2  ;;  %v1935_v24 = vmul.f32 8.0, %v2233_v35  ;;  %vm1939_vm6 = vweird.f32 %v2233_v35 }
0x1423   :  { %v1907_v13 = vmul.f32 %v2231_v11, %v1906_v12 }
0x1424   :  { %v1936_v16 = vsub.f32 1.0, %v1935_v24 }
0x1425   :  { %v1908_v18 = vmul.f32 0.5, %v1907_v13 }
0x1426   :  { %v1937_v32 = vmul.f32 %v2233_v35, %v1936_v16 }
0x1427   :  { %v1909_v63 = vsub.f32 1.5, %v1908_v18 }
0x1428   :  { %v1938_v40 = vadd.f32 %v2233_v35, %v1937_v32 }
0x1429   :  { %v1910_v20 = vmul.f32 %v2231_v11, %v1909_v63 }
0x142a   :  { %v1940_v43 = vsel %vm1939_vm6, %v2233_v35, %v1938_v40 }
0x142b   :  { %v1914_v21 = vsel %vm1913_vm5, %v2231_v11, %v1910_v20  ;;  %v1941_v45 = vmul.f32 %v1940_v43, %v1933_v14 }
0x142c   :  { %v1916_v23 = vmul.f32 %v1914_v21, %v1882_v53 }
0x142e   :  { %v1921_v25 = vmul.f32 %v2155_v39, %v1916_v23 }
0x1430   :  { %v1926_v27 = vadd.f32 %v2156_v9, %v1921_v25 }
0x1432   :  { %v1942_v28 = vsel %vm213_vm4, %v1926_v27, 0.0 }
0x1433   :  { %v1943_v29 = vrot.slane %v1942_v28, 4 }
0x1435   :  { %v1944_v33 = vadd.f32 %v1943_v29, %v1942_v28 }
0x1437   :  { %v1945_v38 = vrot.slane %v1944_v33, 2 }
0x1439   :  { %v1946_v42 = vadd.f32 %v1945_v38, %v1944_v33 }
0x143b   :  { %v1947_v41 = vrot.slane %v1946_v42, 1 }
0x143d   :  { %v1948_v44 = vadd.f32 %v1947_v41, %v1946_v42 }
0x143f   :  { %v1949_v17 = vmul.f32 %v1948_v44, %v1940_v43 }
0x1441   :  { %v1951_v46 = vsel %vm1950_vm7, %v1941_v45, %v1949_v17 }
0x1442   :  { %2100 = vmatmul.msk.f32.vlgmr.msrb.gmra.mxu3 %vm213_vm4, %v1951_v46  ;;  %vm2002_vm4 = vcmask 1024  }
0x14c5   :  { %v1980_v48 = vpop.f32.mrf.mxu3 }
0x14c6   :  { %v1981_v37 = vadd.f32 %v2157_v47, %v1980_v48 }
0x14c8   :  { %v1983_v49 = vsub.f32 0.0, %v1981_v37 }
0x14ca   :  { %v1984_v51 = vmul.f32 1.442695, %v1983_v49 }
0x14cc   :  { %2234 = vpow2.f32 %v1984_v51 }
0x14d2   :  { %v2235_v53 = vpop.eup %2234 }
0x14d3   :  { %v1986_v54 = vadd.f32 1.0, %v2235_v53 }
0x14d5   :  { %2236 = vrcp.f32 %v1986_v54  ;;  %v1998_v59 = vand.u32 2147483648, %v1986_v54  ;;  %v1996_v61 = vand.u32 2147483647, %v1986_v54  ;;  %vm1992_vm9 = vweird.f32 %v1986_v54 }
0x14d7   :  { %v1999_v0 = vor.u32 1.1754944e-38, %v1998_v59  ;;  %vm1997_vm11 = vcmp.eq.f32.partialorder %v1996_v61, 8.507059e+37 }
0x14db   :  { %v2237_v56 = vpop.eup %2236 }
0x14dc   :  { %v1988_v34 = vmul.f32 %v2237_v56, %v1986_v54  ;;  %vm1993_vm8 = vweird.f32 %v2237_v56 }
0x14dd   :  { %vm1994_vm10 = vmor %vm1992_vm9, %vm1993_vm8 }
0x14de   :  { %v1989_v58 = vsub.f32 1.0, %v1988_v34 }
0x14e0   :  { %v1990_v60 = vmul.f32 %v2237_v56, %v1989_v58 }
0x14e2   :  { %v1991_v62 = vadd.f32 %v2237_v56, %v1990_v60 }
0x14e4   :  { %v1995_v2 = vsel %vm1994_vm10, %v2237_v56, %v1991_v62 }
0x14e5   :  { %v2000_v3 = vsel %vm1997_vm11, %v1999_v0, %v1995_v2 }
0x14e6   :  { %2003 = vst.msk [vmem:[%s2917_s17] sm:$0x3] %vm2002_vm4, %v2000_v3 }
0x14e7   :  { %2008 = vsyncpa [#allocation5], 1 }
0x14e8   :  { %2009 = vsyncpa [#allocation7], 1 }
0x14e9   :  { %2010 = vsyncpa [#allocation10], 1 }

</bundles_post_ra>
